<compile_context>
chip_gen: v6e
topology: v6e:2x2x1
jax: 0.10.0
libtpu: 0.0.40
codegen_flags: <defaults>
</compile_context>

<pallas_src>
import functools

import jax
import jax.numpy as jnp
from jax import lax
from jax.experimental import pallas as pl
from jax.experimental.pallas import tpu as pltpu


def _inf_encode_att_kernel(x_ref, cat_w_ref, cat_b_ref, wh_ref, bh_ref,
                           ww_ref, bw_ref, eh_ref, ew_ref, out_ref,
                           hmax_ref, *, h, w):
    """Processes one (batch_tile, C, HWp) lane-dense block (HWp = padded H*W)."""
    bt, c, hwp = x_ref.shape
    mip = cat_w_ref.shape[0]
    f32 = jnp.float32
    xdt = x_ref.dtype

    eh = eh_ref[...]                       # (H, HWp) one-hot rows, x dtype
    ew = ew_ref[...]                       # (W, HWp) one-hot cols, x dtype

    # ---- adaptive avg pools on the MXU: one-hot contractions over lanes -----
    #   h_sum[m, r] = sum_q x[m, r*W+q]   w_sum[m, q] = sum_r x[m, r*W+q]
    x2d = x_ref[...].reshape(bt * c, hwp)
    h_sum = lax.dot_general(x2d, eh, (((1,), (1,)), ((), ())),
                            preferred_element_type=f32)          # (bt*C, H)
    w_sum = lax.dot_general(x2d, ew, (((1,), (1,)), ((), ())),
                            preferred_element_type=f32)          # (bt*C, W)
    h_avg = (h_sum * (1.0 / w)).reshape(bt, c, h)
    w_avg = (w_sum * (1.0 / h)).reshape(bt, c, w)

    # ---- adaptive max pools (kept in the input dtype) ------------------------
    # h_max: per-row max over its W-lane slab, written column-by-column into a
    # VMEM scratch (no width-1 concatenation chains).
    for r in range(h):
        hmax_ref[:, :, r:r + 1] = jnp.max(
            x_ref[:, :, r * w:(r + 1) * w], axis=-1, keepdims=True)
    h_max = hmax_ref[...]                                         # (bt, C, H)

    # w_max: max across the H rows.
    if hwp == h * w and h > 1 and (h & (h - 1)) == 0:
        # log2(H) circular roll+max tree on the XLU; afterwards lanes [0, W)
        # hold the column-wise max over all H rows (needs HWp == H*W exactly).
        xm = x2d
        shift = w
        while shift < hwp:
            xm = jnp.maximum(xm, pltpu.roll(xm, shift=shift, axis=1))
            shift *= 2
        w_max = xm[:, :w].reshape(bt, c, w)
    else:
        w_max = x_ref[:, :, 0:w]
        for r in range(1, h):
            w_max = jnp.maximum(w_max, x_ref[:, :, r * w:(r + 1) * w])

    # ---- tiny 1x1 convs -------------------------------------------------------
    cat_w = cat_w_ref[...]                  # (MIP, C), eval-BN scale folded in
    wh_w = wh_ref[...]                      # (C, MIP)
    ww_w = ww_ref[...]                      # (C, MIP)
    # Hoisted bias broadcasts (JAX does not CSE broadcast_in_dim).
    cat_b_h = jnp.broadcast_to(cat_b_ref[...], (mip, h))
    cat_b_w = jnp.broadcast_to(cat_b_ref[...], (mip, w))
    bh_b = jnp.broadcast_to(bh_ref[...], (c, h))
    bw_b = jnp.broadcast_to(bw_ref[...], (c, w))

    def cat_conv(feat, bias):               # Conv1x1 -> BN(eval, folded) -> ReLU
        y = jnp.dot(cat_w, feat, preferred_element_type=f32) + bias
        return jnp.maximum(y, 0.0)

    # Per-image epilogue: attention maps -> one-hot expansion on the MXU ->
    # gate & store straight from the x ref (no full-block f32 gate temporary).
    for b in range(bt):
        h_feat = (cat_conv(h_avg[b], cat_b_h)
                  + cat_conv(h_max[b].astype(f32), cat_b_h))       # (MIP, H)
        w_feat = (cat_conv(w_avg[b], cat_b_w)
                  + cat_conv(w_max[b].astype(f32), cat_b_w))       # (MIP, W)
        h_att = jax.nn.sigmoid(
            jnp.dot(wh_w, h_feat, preferred_element_type=f32) + bh_b)  # (C, H)
        w_att = jax.nn.sigmoid(
            jnp.dot(ww_w, w_feat, preferred_element_type=f32) + bw_b)  # (C, W)
        # Expansion matmuls in the input dtype (one-hots are exact).
        gate_h = jnp.dot(h_att.astype(xdt), eh)                        # (C, HWp)
        gate_w = jnp.dot(w_att.astype(xdt), ew)                        # (C, HWp)
        out_ref[b] = (x_ref[b] * gate_h * gate_w).astype(out_ref.dtype)


def inf_encode_att(x, cat_w_eff, cat_b_eff, wh, bh, ww, bw, *, batch_tile=None):
    n, c, h, w = x.shape
    hw = h * w
    mip = cat_w_eff.shape[0]
    itemsize = jnp.dtype(x.dtype).itemsize

    # Lane-density guard: pad H*W up to a multiple of 128 (zero fill).
    hwp = ((hw + 127) // 128) * 128
    x_flat = x.reshape(n, c, hw)                      # free reshape of NCHW
    if hwp != hw:
        x_flat = jnp.pad(x_flat, ((0, 0), (0, 0), (0, hwp - hw)))

    # One-hot pooling / expansion matrices (exact in bf16).  Pad columns are
    # all-zero, so they contribute nothing to the sums and get a zero gate.
    cols = jnp.arange(hwp, dtype=jnp.int32)
    eh = ((cols[None, :] // w) == jnp.arange(h, dtype=jnp.int32)[:, None])
    ew = (((cols[None, :] % w) == jnp.arange(w, dtype=jnp.int32)[:, None])
          & (cols[None, :] < hw))
    eh = eh.astype(x.dtype)                           # (H, HWp)
    ew = ew.astype(x.dtype)                           # (W, HWp)

    # ---- VMEM budget / explicit limit (v5e/v6e: 128 MiB, v7x: 64 MiB) -------
    try:
        vmem_cap = int(pltpu.get_tpu_info().vmem_capacity_bytes)
    except Exception:
        vmem_cap = 64 * 1024 * 1024
    vmem_limit = max(32 << 20, min(int(vmem_cap * 0.85), 112 << 20))

    const_bytes = (h + w) * hwp * itemsize + 4 * (c * mip + c + mip) * 4
    img_bytes = c * hwp * itemsize

    if batch_tile is None:
        # Pipeline depth first: target >= ~8 grid steps (>= 4 per TensorCore on
        # 2-TC chips) where N allows, with x blocks near the ~1 MiB knee.
        target_bt = max(1, (1 << 20) // img_bytes)
        step_cap = max(1, n // 8)
        bt = max(1, min(target_bt, step_cap))
        # VMEM working-set cap: 2x(x)+2x(out) double-buffered + ~3 block-sized
        # in-kernel temporaries + resident constants.
        while bt > 1 and 7 * bt * img_bytes + const_bytes > vmem_limit // 2:
            bt -= 1
        while n % bt:
            bt -= 1
        batch_tile = bt
    assert batch_tile >= 1 and n % batch_tile == 0, "batch_tile must divide N"
    steps = n // batch_tile

    def full_spec(shape):
        return pl.BlockSpec(shape, lambda i, _n=len(shape): (0,) * _n)

    kernel = functools.partial(_inf_encode_att_kernel, h=h, w=w)

    out_flat = pl.pallas_call(
        kernel,
        out_shape=jax.ShapeDtypeStruct((n, c, hwp), x.dtype),
        grid=(steps,),
        in_specs=[
            pl.BlockSpec((batch_tile, c, hwp), lambda i: (i, 0, 0)),  # x
            full_spec((mip, c)),     # folded cat_conv weight
            full_spec((mip, 1)),     # folded cat_conv bias (BN shift)
            full_spec((c, mip)),     # conv_h weight
            full_spec((c, 1)),       # conv_h bias
            full_spec((c, mip)),     # conv_w weight
            full_spec((c, 1)),       # conv_w bias
            full_spec((h, hwp)),     # one-hot H rows
            full_spec((w, hwp)),     # one-hot W cols
        ],
        out_specs=pl.BlockSpec((batch_tile, c, hwp), lambda i: (i, 0, 0)),
        scratch_shapes=[pltpu.VMEM((batch_tile, c, h), x.dtype)],
        # Only the batch axis is tileable: cat_conv contracts over all C, so
        # every channel must be resident when the pooled features are built.
        compiler_params=pltpu.CompilerParams(
            dimension_semantics=("parallel",),
            vmem_limit_bytes=vmem_limit),
    )(x_flat, cat_w_eff, cat_b_eff, wh, bh, ww, bw, eh, ew)

    out = out_flat if hwp == hw else out_flat[:, :, :hw]
    return out.reshape(n, c, h, w)


def ref_forward(x, cat_w, bn_g, bn_b, bn_m, bn_v, wh, bh, ww, bw):
    """Pure-JAX transcription of the PyTorch forward (eval-mode BN)."""
    n, c, h, w = x.shape
    eps = 1e-5
    hi = jax.lax.Precision.HIGHEST
    h_max = jnp.max(x, axis=3, keepdims=True)                                  # (n,c,h,1)
    h_avg = jnp.mean(x, axis=3, keepdims=True)
    w_max = jnp.transpose(jnp.max(x, axis=2, keepdims=True), (0, 1, 3, 2))     # (n,c,w,1)
    w_avg = jnp.transpose(jnp.mean(x, axis=2, keepdims=True), (0, 1, 3, 2))

    def cat_conv(t):                                                           # (n,c,h+w,1)
        y = jnp.einsum('oc,ncsk->nosk', cat_w, t, precision=hi)
        y = (y - bn_m[None, :, None, None]) / jnp.sqrt(bn_v[None, :, None, None] + eps)
        y = y * bn_g[None, :, None, None] + bn_b[None, :, None, None]
        return jnp.maximum(y, 0.0)

    avg_cat = cat_conv(jnp.concatenate([h_avg, w_avg], axis=2))
    max_cat = cat_conv(jnp.concatenate([h_max, w_max], axis=2))
    ha, wa = avg_cat[:, :, :h], avg_cat[:, :, h:]
    hm, wm = max_cat[:, :, :h], max_cat[:, :, h:]
    wa = jnp.transpose(wa, (0, 1, 3, 2))
    wm = jnp.transpose(wm, (0, 1, 3, 2))
    h_att = jnp.einsum('om,nmsk->nosk', wh, hm + ha, precision=hi) + bh[None, :, None, None]
    w_att = jnp.einsum('om,nmks->noks', ww, wm + wa, precision=hi) + bw[None, :, None, None]
    h_att = jax.nn.sigmoid(h_att)                                              # (n,c,h,1)
    w_att = jax.nn.sigmoid(w_att)                                              # (n,c,1,w)
    return x * w_att * h_att


if __name__ == "__main__":
    # Small shapes consistent with the module: N=2, C=32, H=W=16, reduction=16
    N, C, H, W = 2, 32, 16, 16
    reduction = 16
    MIP = max(8, C // reduction)

    key = jax.random.PRNGKey(0)
    kx, k1, k2, k3, k4, k5, k6, k7 = jax.random.split(key, 8)

    x = jax.random.normal(kx, (N, C, H, W), dtype=jnp.float32)

    # Deterministic synthetic parameters (PyTorch param shapes, 1x1 kernels squeezed).
    cat_w = 0.2 * jax.random.normal(k1, (MIP, C), dtype=jnp.float32)   # Conv2d(C, MIP, 1, bias=False)
    bn_g = 1.0 + 0.1 * jax.random.normal(k2, (MIP,), dtype=jnp.float32)
    bn_b = 0.1 * jax.random.normal(k3, (MIP,), dtype=jnp.float32)
    bn_m = jnp.zeros((MIP,), dtype=jnp.float32)                        # running_mean
    bn_v = jnp.ones((MIP,), dtype=jnp.float32)                         # running_var
    wh = 0.2 * jax.random.normal(k4, (C, MIP), dtype=jnp.float32)      # conv_h weight
    bh = 0.1 * jax.random.normal(k5, (C,), dtype=jnp.float32)          # conv_h bias
    ww = 0.2 * jax.random.normal(k6, (C, MIP), dtype=jnp.float32)      # conv_w weight
    bw = 0.1 * jax.random.normal(k7, (C,), dtype=jnp.float32)          # conv_w bias

    # Fold eval-mode BatchNorm into the (bias-free) 1x1 cat_conv.
    eps = 1e-5
    bn_scale = bn_g / jnp.sqrt(bn_v + eps)                             # (MIP,)
    cat_w_eff = cat_w * bn_scale[:, None]                              # (MIP, C)
    cat_b_eff = (bn_b - bn_m * bn_scale)[:, None]                      # (MIP, 1)

    out = inf_encode_att(x, cat_w_eff, cat_b_eff,
                         wh, bh[:, None], ww, bw[:, None])
    out = jax.block_until_ready(out)

    ref = ref_forward(x, cat_w, bn_g, bn_b, bn_m, bn_v, wh, bh, ww, bw)
    ref = jax.block_until_ready(ref)

    assert out.shape == (N, C, H, W)
    assert jnp.allclose(out, ref, rtol=1e-4, atol=1e-4), (
        f"max abs err {jnp.max(jnp.abs(out - ref))}")

    print("KERNEL_OK")
</pallas_src>

<mosaic_0001>
module attributes {stable_mosaic.version = 11 : i64} {
  func.func @_inf_encode_att_kernel(%arg0: i32, %arg1: memref<1x32x256xf32, #tpu.memory_space<vmem>>, %arg2: memref<8x32xf32, #tpu.memory_space<vmem>>, %arg3: memref<8x1xf32, #tpu.memory_space<vmem>>, %arg4: memref<32x8xf32, #tpu.memory_space<vmem>>, %arg5: memref<32x1xf32, #tpu.memory_space<vmem>>, %arg6: memref<32x8xf32, #tpu.memory_space<vmem>>, %arg7: memref<32x1xf32, #tpu.memory_space<vmem>>, %arg8: memref<16x256xf32, #tpu.memory_space<vmem>>, %arg9: memref<16x256xf32, #tpu.memory_space<vmem>>, %arg10: memref<1x32x256xf32, #tpu.memory_space<vmem>>, %arg11: memref<1x32x16xf32, #tpu.memory_space<vmem>>) attributes {dimension_semantics = [#tpu.dimension_semantics<parallel>], iteration_bounds = array<i64: 2>, scalar_prefetch = 0 : i64, scratch_operands = 1 : i64, tpu.core_type = #tpu.core_type<tc>, window_params = [{transform_indices = @transform_0, window_bounds = array<i64: 1, 32, 256>}, {pipeline_mode = #tpu.pipeline_mode<synchronous>, transform_indices = @transform_1, window_bounds = array<i64: 8, 32>}, {pipeline_mode = #tpu.pipeline_mode<synchronous>, transform_indices = @transform_2, window_bounds = array<i64: 8, 1>}, {pipeline_mode = #tpu.pipeline_mode<synchronous>, transform_indices = @transform_3, window_bounds = array<i64: 32, 8>}, {pipeline_mode = #tpu.pipeline_mode<synchronous>, transform_indices = @transform_4, window_bounds = array<i64: 32, 1>}, {pipeline_mode = #tpu.pipeline_mode<synchronous>, transform_indices = @transform_5, window_bounds = array<i64: 32, 8>}, {pipeline_mode = #tpu.pipeline_mode<synchronous>, transform_indices = @transform_6, window_bounds = array<i64: 32, 1>}, {pipeline_mode = #tpu.pipeline_mode<synchronous>, transform_indices = @transform_7, window_bounds = array<i64: 16, 256>}, {pipeline_mode = #tpu.pipeline_mode<synchronous>, transform_indices = @transform_8, window_bounds = array<i64: 16, 256>}, {transform_indices = @transform_9, window_bounds = array<i64: 1, 32, 256>}]} {
    %c0 = arith.constant 0 : index
    %c0_0 = arith.constant 0 : index
    %0 = vector.load %arg8[%c0, %c0_0] : memref<16x256xf32, #tpu.memory_space<vmem>>, vector<16x256xf32>
    %c0_1 = arith.constant 0 : index
    %c0_2 = arith.constant 0 : index
    %1 = vector.load %arg9[%c0_1, %c0_2] : memref<16x256xf32, #tpu.memory_space<vmem>>, vector<16x256xf32>
    %c0_3 = arith.constant 0 : index
    %c0_4 = arith.constant 0 : index
    %c0_5 = arith.constant 0 : index
    %2 = vector.load %arg1[%c0_3, %c0_4, %c0_5] : memref<1x32x256xf32, #tpu.memory_space<vmem>>, vector<1x32x256xf32>
    %3 = vector.shape_cast %2 : vector<1x32x256xf32> to vector<32x256xf32>
    %cst = arith.constant dense<0.000000e+00> : vector<32x16xf32>
    %4 = tpu.matmul %3, %0, %cst {dimension_numbers = #tpu.dot_dimension_numbers<[1], [1], [0], [0], [0, 0, 1, 0], [], []>} : vector<32x256xf32>, vector<16x256xf32>, vector<32x16xf32> -> vector<32x16xf32>
    %cst_6 = arith.constant dense<0.000000e+00> : vector<32x16xf32>
    %5 = tpu.matmul %3, %1, %cst_6 {dimension_numbers = #tpu.dot_dimension_numbers<[1], [1], [0], [0], [0, 0, 1, 0], [], []>} : vector<32x256xf32>, vector<16x256xf32>, vector<32x16xf32> -> vector<32x16xf32>
    %cst_7 = arith.constant 6.250000e-02 : f32
    %6 = vector.broadcast %cst_7 : f32 to vector<32x16xf32>
    %7 = arith.mulf %4, %6 : vector<32x16xf32>
    %8 = vector.shape_cast %7 : vector<32x16xf32> to vector<1x32x16xf32>
    %cst_8 = arith.constant 6.250000e-02 : f32
    %9 = vector.broadcast %cst_8 : f32 to vector<32x16xf32>
    %10 = arith.mulf %5, %9 : vector<32x16xf32>
    %11 = vector.shape_cast %10 : vector<32x16xf32> to vector<1x32x16xf32>
    %c0_9 = arith.constant 0 : index
    %c0_10 = arith.constant 0 : index
    %c0_11 = arith.constant 0 : index
    %12 = vector.load %arg1[%c0_9, %c0_10, %c0_11] : memref<1x32x256xf32, #tpu.memory_space<vmem>>, vector<1x32x16xf32>
    %cst_12 = arith.constant dense<0xFF800000> : vector<1x32xf32>
    %13 = vector.multi_reduction <maximumf>, %12, %cst_12 [2] : vector<1x32x16xf32> to vector<1x32xf32>
    %14 = vector.shape_cast %13 : vector<1x32xf32> to vector<1x32x1xf32>
    %c0_13 = arith.constant 0 : index
    %c0_14 = arith.constant 0 : index
    %c0_15 = arith.constant 0 : index
    %15 = vector.load %arg11[%c0_13, %c0_14, %c0_15] : memref<1x32x16xf32, #tpu.memory_space<vmem>>, vector<1x32x1xf32>
    tpu.vector_store %arg11[%c0_13, %c0_14, %c0_15], %14 {strides = array<i32>} : memref<1x32x16xf32, #tpu.memory_space<vmem>>, vector<1x32x1xf32>,
    %c0_16 = arith.constant 0 : index
    %c0_17 = arith.constant 0 : index
    %c16 = arith.constant 16 : index
    %16 = vector.load %arg1[%c0_16, %c0_17, %c16] : memref<1x32x256xf32, #tpu.memory_space<vmem>>, vector<1x32x16xf32>
    %cst_18 = arith.constant dense<0xFF800000> : vector<1x32xf32>
    %17 = vector.multi_reduction <maximumf>, %16, %cst_18 [2] : vector<1x32x16xf32> to vector<1x32xf32>
    %18 = vector.shape_cast %17 : vector<1x32xf32> to vector<1x32x1xf32>
    %c0_19 = arith.constant 0 : index
    %c0_20 = arith.constant 0 : index
    %c1 = arith.constant 1 : index
    %19 = vector.load %arg11[%c0_19, %c0_20, %c1] : memref<1x32x16xf32, #tpu.memory_space<vmem>>, vector<1x32x1xf32>
    tpu.vector_store %arg11[%c0_19, %c0_20, %c1], %18 {strides = array<i32>} : memref<1x32x16xf32, #tpu.memory_space<vmem>>, vector<1x32x1xf32>,
    %c0_21 = arith.constant 0 : index
    %c0_22 = arith.constant 0 : index
    %c32 = arith.constant 32 : index
    %20 = vector.load %arg1[%c0_21, %c0_22, %c32] : memref<1x32x256xf32, #tpu.memory_space<vmem>>, vector<1x32x16xf32>
    %cst_23 = arith.constant dense<0xFF800000> : vector<1x32xf32>
    %21 = vector.multi_reduction <maximumf>, %20, %cst_23 [2] : vector<1x32x16xf32> to vector<1x32xf32>
    %22 = vector.shape_cast %21 : vector<1x32xf32> to vector<1x32x1xf32>
    %c0_24 = arith.constant 0 : index
    %c0_25 = arith.constant 0 : index
    %c2 = arith.constant 2 : index
    %23 = vector.load %arg11[%c0_24, %c0_25, %c2] : memref<1x32x16xf32, #tpu.memory_space<vmem>>, vector<1x32x1xf32>
    tpu.vector_store %arg11[%c0_24, %c0_25, %c2], %22 {strides = array<i32>} : memref<1x32x16xf32, #tpu.memory_space<vmem>>, vector<1x32x1xf32>,
    %c0_26 = arith.constant 0 : index
    %c0_27 = arith.constant 0 : index
    %c48 = arith.constant 48 : index
    %24 = vector.load %arg1[%c0_26, %c0_27, %c48] : memref<1x32x256xf32, #tpu.memory_space<vmem>>, vector<1x32x16xf32>
    %cst_28 = arith.constant dense<0xFF800000> : vector<1x32xf32>
    %25 = vector.multi_reduction <maximumf>, %24, %cst_28 [2] : vector<1x32x16xf32> to vector<1x32xf32>
    %26 = vector.shape_cast %25 : vector<1x32xf32> to vector<1x32x1xf32>
    %c0_29 = arith.constant 0 : index
    %c0_30 = arith.constant 0 : index
    %c3 = arith.constant 3 : index
    %27 = vector.load %arg11[%c0_29, %c0_30, %c3] : memref<1x32x16xf32, #tpu.memory_space<vmem>>, vector<1x32x1xf32>
    tpu.vector_store %arg11[%c0_29, %c0_30, %c3], %26 {strides = array<i32>} : memref<1x32x16xf32, #tpu.memory_space<vmem>>, vector<1x32x1xf32>,
    %c0_31 = arith.constant 0 : index
    %c0_32 = arith.constant 0 : index
    %c64 = arith.constant 64 : index
    %28 = vector.load %arg1[%c0_31, %c0_32, %c64] : memref<1x32x256xf32, #tpu.memory_space<vmem>>, vector<1x32x16xf32>
    %cst_33 = arith.constant dense<0xFF800000> : vector<1x32xf32>
    %29 = vector.multi_reduction <maximumf>, %28, %cst_33 [2] : vector<1x32x16xf32> to vector<1x32xf32>
    %30 = vector.shape_cast %29 : vector<1x32xf32> to vector<1x32x1xf32>
    %c0_34 = arith.constant 0 : index
    %c0_35 = arith.constant 0 : index
    %c4 = arith.constant 4 : index
    %31 = vector.load %arg11[%c0_34, %c0_35, %c4] : memref<1x32x16xf32, #tpu.memory_space<vmem>>, vector<1x32x1xf32>
    tpu.vector_store %arg11[%c0_34, %c0_35, %c4], %30 {strides = array<i32>} : memref<1x32x16xf32, #tpu.memory_space<vmem>>, vector<1x32x1xf32>,
    %c0_36 = arith.constant 0 : index
    %c0_37 = arith.constant 0 : index
    %c80 = arith.constant 80 : index
    %32 = vector.load %arg1[%c0_36, %c0_37, %c80] : memref<1x32x256xf32, #tpu.memory_space<vmem>>, vector<1x32x16xf32>
    %cst_38 = arith.constant dense<0xFF800000> : vector<1x32xf32>
    %33 = vector.multi_reduction <maximumf>, %32, %cst_38 [2] : vector<1x32x16xf32> to vector<1x32xf32>
    %34 = vector.shape_cast %33 : vector<1x32xf32> to vector<1x32x1xf32>
    %c0_39 = arith.constant 0 : index
    %c0_40 = arith.constant 0 : index
    %c5 = arith.constant 5 : index
    %35 = vector.load %arg11[%c0_39, %c0_40, %c5] : memref<1x32x16xf32, #tpu.memory_space<vmem>>, vector<1x32x1xf32>
    tpu.vector_store %arg11[%c0_39, %c0_40, %c5], %34 {strides = array<i32>} : memref<1x32x16xf32, #tpu.memory_space<vmem>>, vector<1x32x1xf32>,
    %c0_41 = arith.constant 0 : index
    %c0_42 = arith.constant 0 : index
    %c96 = arith.constant 96 : index
    %36 = vector.load %arg1[%c0_41, %c0_42, %c96] : memref<1x32x256xf32, #tpu.memory_space<vmem>>, vector<1x32x16xf32>
    %cst_43 = arith.constant dense<0xFF800000> : vector<1x32xf32>
    %37 = vector.multi_reduction <maximumf>, %36, %cst_43 [2] : vector<1x32x16xf32> to vector<1x32xf32>
    %38 = vector.shape_cast %37 : vector<1x32xf32> to vector<1x32x1xf32>
    %c0_44 = arith.constant 0 : index
    %c0_45 = arith.constant 0 : index
    %c6 = arith.constant 6 : index
    %39 = vector.load %arg11[%c0_44, %c0_45, %c6] : memref<1x32x16xf32, #tpu.memory_space<vmem>>, vector<1x32x1xf32>
    tpu.vector_store %arg11[%c0_44, %c0_45, %c6], %38 {strides = array<i32>} : memref<1x32x16xf32, #tpu.memory_space<vmem>>, vector<1x32x1xf32>,
    %c0_46 = arith.constant 0 : index
    %c0_47 = arith.constant 0 : index
    %c112 = arith.constant 112 : index
    %40 = vector.load %arg1[%c0_46, %c0_47, %c112] : memref<1x32x256xf32, #tpu.memory_space<vmem>>, vector<1x32x16xf32>
    %cst_48 = arith.constant dense<0xFF800000> : vector<1x32xf32>
    %41 = vector.multi_reduction <maximumf>, %40, %cst_48 [2] : vector<1x32x16xf32> to vector<1x32xf32>
    %42 = vector.shape_cast %41 : vector<1x32xf32> to vector<1x32x1xf32>
    %c0_49 = arith.constant 0 : index
    %c0_50 = arith.constant 0 : index
    %c7 = arith.constant 7 : index
    %43 = vector.load %arg11[%c0_49, %c0_50, %c7] : memref<1x32x16xf32, #tpu.memory_space<vmem>>, vector<1x32x1xf32>
    tpu.vector_store %arg11[%c0_49, %c0_50, %c7], %42 {strides = array<i32>} : memref<1x32x16xf32, #tpu.memory_space<vmem>>, vector<1x32x1xf32>,
    %c0_51 = arith.constant 0 : index
    %c0_52 = arith.constant 0 : index
    %c128 = arith.constant 128 : index
    %44 = vector.load %arg1[%c0_51, %c0_52, %c128] : memref<1x32x256xf32, #tpu.memory_space<vmem>>, vector<1x32x16xf32>
    %cst_53 = arith.constant dense<0xFF800000> : vector<1x32xf32>
    %45 = vector.multi_reduction <maximumf>, %44, %cst_53 [2] : vector<1x32x16xf32> to vector<1x32xf32>
    %46 = vector.shape_cast %45 : vector<1x32xf32> to vector<1x32x1xf32>
    %c0_54 = arith.constant 0 : index
    %c0_55 = arith.constant 0 : index
    %c8 = arith.constant 8 : index
    %47 = vector.load %arg11[%c0_54, %c0_55, %c8] : memref<1x32x16xf32, #tpu.memory_space<vmem>>, vector<1x32x1xf32>
    tpu.vector_store %arg11[%c0_54, %c0_55, %c8], %46 {strides = array<i32>} : memref<1x32x16xf32, #tpu.memory_space<vmem>>, vector<1x32x1xf32>,
    %c0_56 = arith.constant 0 : index
    %c0_57 = arith.constant 0 : index
    %c144 = arith.constant 144 : index
    %48 = vector.load %arg1[%c0_56, %c0_57, %c144] : memref<1x32x256xf32, #tpu.memory_space<vmem>>, vector<1x32x16xf32>
    %cst_58 = arith.constant dense<0xFF800000> : vector<1x32xf32>
    %49 = vector.multi_reduction <maximumf>, %48, %cst_58 [2] : vector<1x32x16xf32> to vector<1x32xf32>
    %50 = vector.shape_cast %49 : vector<1x32xf32> to vector<1x32x1xf32>
    %c0_59 = arith.constant 0 : index
    %c0_60 = arith.constant 0 : index
    %c9 = arith.constant 9 : index
    %51 = vector.load %arg11[%c0_59, %c0_60, %c9] : memref<1x32x16xf32, #tpu.memory_space<vmem>>, vector<1x32x1xf32>
    tpu.vector_store %arg11[%c0_59, %c0_60, %c9], %50 {strides = array<i32>} : memref<1x32x16xf32, #tpu.memory_space<vmem>>, vector<1x32x1xf32>,
    %c0_61 = arith.constant 0 : index
    %c0_62 = arith.constant 0 : index
    %c160 = arith.constant 160 : index
    %52 = vector.load %arg1[%c0_61, %c0_62, %c160] : memref<1x32x256xf32, #tpu.memory_space<vmem>>, vector<1x32x16xf32>
    %cst_63 = arith.constant dense<0xFF800000> : vector<1x32xf32>
    %53 = vector.multi_reduction <maximumf>, %52, %cst_63 [2] : vector<1x32x16xf32> to vector<1x32xf32>
    %54 = vector.shape_cast %53 : vector<1x32xf32> to vector<1x32x1xf32>
    %c0_64 = arith.constant 0 : index
    %c0_65 = arith.constant 0 : index
    %c10 = arith.constant 10 : index
    %55 = vector.load %arg11[%c0_64, %c0_65, %c10] : memref<1x32x16xf32, #tpu.memory_space<vmem>>, vector<1x32x1xf32>
    tpu.vector_store %arg11[%c0_64, %c0_65, %c10], %54 {strides = array<i32>} : memref<1x32x16xf32, #tpu.memory_space<vmem>>, vector<1x32x1xf32>,
    %c0_66 = arith.constant 0 : index
    %c0_67 = arith.constant 0 : index
    %c176 = arith.constant 176 : index
    %56 = vector.load %arg1[%c0_66, %c0_67, %c176] : memref<1x32x256xf32, #tpu.memory_space<vmem>>, vector<1x32x16xf32>
    %cst_68 = arith.constant dense<0xFF800000> : vector<1x32xf32>
    %57 = vector.multi_reduction <maximumf>, %56, %cst_68 [2] : vector<1x32x16xf32> to vector<1x32xf32>
    %58 = vector.shape_cast %57 : vector<1x32xf32> to vector<1x32x1xf32>
    %c0_69 = arith.constant 0 : index
    %c0_70 = arith.constant 0 : index
    %c11 = arith.constant 11 : index
    %59 = vector.load %arg11[%c0_69, %c0_70, %c11] : memref<1x32x16xf32, #tpu.memory_space<vmem>>, vector<1x32x1xf32>
    tpu.vector_store %arg11[%c0_69, %c0_70, %c11], %58 {strides = array<i32>} : memref<1x32x16xf32, #tpu.memory_space<vmem>>, vector<1x32x1xf32>,
    %c0_71 = arith.constant 0 : index
    %c0_72 = arith.constant 0 : index
    %c192 = arith.constant 192 : index
    %60 = vector.load %arg1[%c0_71, %c0_72, %c192] : memref<1x32x256xf32, #tpu.memory_space<vmem>>, vector<1x32x16xf32>
    %cst_73 = arith.constant dense<0xFF800000> : vector<1x32xf32>
    %61 = vector.multi_reduction <maximumf>, %60, %cst_73 [2] : vector<1x32x16xf32> to vector<1x32xf32>
    %62 = vector.shape_cast %61 : vector<1x32xf32> to vector<1x32x1xf32>
    %c0_74 = arith.constant 0 : index
    %c0_75 = arith.constant 0 : index
    %c12 = arith.constant 12 : index
    %63 = vector.load %arg11[%c0_74, %c0_75, %c12] : memref<1x32x16xf32, #tpu.memory_space<vmem>>, vector<1x32x1xf32>
    tpu.vector_store %arg11[%c0_74, %c0_75, %c12], %62 {strides = array<i32>} : memref<1x32x16xf32, #tpu.memory_space<vmem>>, vector<1x32x1xf32>,
    %c0_76 = arith.constant 0 : index
    %c0_77 = arith.constant 0 : index
    %c208 = arith.constant 208 : index
    %64 = vector.load %arg1[%c0_76, %c0_77, %c208] : memref<1x32x256xf32, #tpu.memory_space<vmem>>, vector<1x32x16xf32>
    %cst_78 = arith.constant dense<0xFF800000> : vector<1x32xf32>
    %65 = vector.multi_reduction <maximumf>, %64, %cst_78 [2] : vector<1x32x16xf32> to vector<1x32xf32>
    %66 = vector.shape_cast %65 : vector<1x32xf32> to vector<1x32x1xf32>
    %c0_79 = arith.constant 0 : index
    %c0_80 = arith.constant 0 : index
    %c13 = arith.constant 13 : index
    %67 = vector.load %arg11[%c0_79, %c0_80, %c13] : memref<1x32x16xf32, #tpu.memory_space<vmem>>, vector<1x32x1xf32>
    tpu.vector_store %arg11[%c0_79, %c0_80, %c13], %66 {strides = array<i32>} : memref<1x32x16xf32, #tpu.memory_space<vmem>>, vector<1x32x1xf32>,
    %c0_81 = arith.constant 0 : index
    %c0_82 = arith.constant 0 : index
    %c224 = arith.constant 224 : index
    %68 = vector.load %arg1[%c0_81, %c0_82, %c224] : memref<1x32x256xf32, #tpu.memory_space<vmem>>, vector<1x32x16xf32>
    %cst_83 = arith.constant dense<0xFF800000> : vector<1x32xf32>
    %69 = vector.multi_reduction <maximumf>, %68, %cst_83 [2] : vector<1x32x16xf32> to vector<1x32xf32>
    %70 = vector.shape_cast %69 : vector<1x32xf32> to vector<1x32x1xf32>
    %c0_84 = arith.constant 0 : index
    %c0_85 = arith.constant 0 : index
    %c14 = arith.constant 14 : index
    %71 = vector.load %arg11[%c0_84, %c0_85, %c14] : memref<1x32x16xf32, #tpu.memory_space<vmem>>, vector<1x32x1xf32>
    tpu.vector_store %arg11[%c0_84, %c0_85, %c14], %70 {strides = array<i32>} : memref<1x32x16xf32, #tpu.memory_space<vmem>>, vector<1x32x1xf32>,
    %c0_86 = arith.constant 0 : index
    %c0_87 = arith.constant 0 : index
    %c240 = arith.constant 240 : index
    %72 = vector.load %arg1[%c0_86, %c0_87, %c240] : memref<1x32x256xf32, #tpu.memory_space<vmem>>, vector<1x32x16xf32>
    %cst_88 = arith.constant dense<0xFF800000> : vector<1x32xf32>
    %73 = vector.multi_reduction <maximumf>, %72, %cst_88 [2] : vector<1x32x16xf32> to vector<1x32xf32>
    %74 = vector.shape_cast %73 : vector<1x32xf32> to vector<1x32x1xf32>
    %c0_89 = arith.constant 0 : index
    %c0_90 = arith.constant 0 : index
    %c15 = arith.constant 15 : index
    %75 = vector.load %arg11[%c0_89, %c0_90, %c15] : memref<1x32x16xf32, #tpu.memory_space<vmem>>, vector<1x32x1xf32>
    tpu.vector_store %arg11[%c0_89, %c0_90, %c15], %74 {strides = array<i32>} : memref<1x32x16xf32, #tpu.memory_space<vmem>>, vector<1x32x1xf32>,
    %c0_91 = arith.constant 0 : index
    %c0_92 = arith.constant 0 : index
    %c0_93 = arith.constant 0 : index
    %76 = vector.load %arg11[%c0_91, %c0_92, %c0_93] : memref<1x32x16xf32, #tpu.memory_space<vmem>>, vector<1x32x16xf32>
    %c16_i32 = arith.constant 16 : i32
    %77 = tpu.dynamic_rotate %3 by %c16_i32 dim 1 : vector<32x256xf32>, i32 -> vector<32x256xf32>
    %78 = arith.maximumf %3, %77 : vector<32x256xf32>
    %c32_i32 = arith.constant 32 : i32
    %79 = tpu.dynamic_rotate %78 by %c32_i32 dim 1 : vector<32x256xf32>, i32 -> vector<32x256xf32>
    %80 = arith.maximumf %78, %79 : vector<32x256xf32>
    %c64_i32 = arith.constant 64 : i32
    %81 = tpu.dynamic_rotate %80 by %c64_i32 dim 1 : vector<32x256xf32>, i32 -> vector<32x256xf32>
    %82 = arith.maximumf %80, %81 : vector<32x256xf32>
    %c128_i32 = arith.constant 128 : i32
    %83 = tpu.dynamic_rotate %82 by %c128_i32 dim 1 : vector<32x256xf32>, i32 -> vector<32x256xf32>
    %84 = arith.maximumf %82, %83 : vector<32x256xf32>
    %85 = vector.extract_strided_slice %84 {offsets = [0, 0], sizes = [32, 16], strides = [1, 1]} : vector<32x256xf32> to vector<32x16xf32>
    %86 = vector.shape_cast %85 : vector<32x16xf32> to vector<1x32x16xf32>
    %c0_94 = arith.constant 0 : index
    %c0_95 = arith.constant 0 : index
    %87 = vector.load %arg2[%c0_94, %c0_95] : memref<8x32xf32, #tpu.memory_space<vmem>>, vector<8x32xf32>
    %c0_96 = arith.constant 0 : index
    %c0_97 = arith.constant 0 : index
    %88 = vector.load %arg4[%c0_96, %c0_97] : memref<32x8xf32, #tpu.memory_space<vmem>>, vector<32x8xf32>
    %c0_98 = arith.constant 0 : index
    %c0_99 = arith.constant 0 : index
    %89 = vector.load %arg6[%c0_98, %c0_99] : memref<32x8xf32, #tpu.memory_space<vmem>>, vector<32x8xf32>
    %c0_100 = arith.constant 0 : index
    %c0_101 = arith.constant 0 : index
    %90 = vector.load %arg3[%c0_100, %c0_101] : memref<8x1xf32, #tpu.memory_space<vmem>>, vector<8x1xf32>
    %91 = vector.shape_cast %90 : vector<8x1xf32> to vector<8x1xf32>
    %92 = vector.broadcast %91 : vector<8x1xf32> to vector<8x16xf32>
    %c0_102 = arith.constant 0 : index
    %c0_103 = arith.constant 0 : index
    %93 = vector.load %arg3[%c0_102, %c0_103] : memref<8x1xf32, #tpu.memory_space<vmem>>, vector<8x1xf32>
    %94 = vector.shape_cast %93 : vector<8x1xf32> to vector<8x1xf32>
    %95 = vector.broadcast %94 : vector<8x1xf32> to vector<8x16xf32>
    %c0_104 = arith.constant 0 : index
    %c0_105 = arith.constant 0 : index
    %96 = vector.load %arg5[%c0_104, %c0_105] : memref<32x1xf32, #tpu.memory_space<vmem>>, vector<32x1xf32>
    %97 = vector.shape_cast %96 : vector<32x1xf32> to vector<32x1xf32>
    %98 = vector.broadcast %97 : vector<32x1xf32> to vector<32x16xf32>
    %c0_106 = arith.constant 0 : index
    %c0_107 = arith.constant 0 : index
    %99 = vector.load %arg7[%c0_106, %c0_107] : memref<32x1xf32, #tpu.memory_space<vmem>>, vector<32x1xf32>
    %100 = vector.shape_cast %99 : vector<32x1xf32> to vector<32x1xf32>
    %101 = vector.broadcast %100 : vector<32x1xf32> to vector<32x16xf32>
    %102 = vector.shape_cast %8 : vector<1x32x16xf32> to vector<32x16xf32>
    %cst_108 = arith.constant dense<0.000000e+00> : vector<8x16xf32>
    %103 = tpu.matmul %87, %102, %cst_108 {dimension_numbers = #tpu.dot_dimension_numbers<[1], [0], [0], [1], [0, 0, 1, 1], [], []>} : vector<8x32xf32>, vector<32x16xf32>, vector<8x16xf32> -> vector<8x16xf32>
    %104 = arith.addf %103, %92 : vector<8x16xf32>
    %cst_109 = arith.constant 0.000000e+00 : f32
    %105 = vector.broadcast %cst_109 : f32 to vector<8x16xf32>
    %106 = arith.maximumf %104, %105 : vector<8x16xf32>
    %107 = vector.shape_cast %76 : vector<1x32x16xf32> to vector<32x16xf32>
    %cst_110 = arith.constant dense<0.000000e+00> : vector<8x16xf32>
    %108 = tpu.matmul %87, %107, %cst_110 {dimension_numbers = #tpu.dot_dimension_numbers<[1], [0], [0], [1], [0, 0, 1, 1], [], []>} : vector<8x32xf32>, vector<32x16xf32>, vector<8x16xf32> -> vector<8x16xf32>
    %109 = arith.addf %108, %92 : vector<8x16xf32>
    %cst_111 = arith.constant 0.000000e+00 : f32
    %110 = vector.broadcast %cst_111 : f32 to vector<8x16xf32>
    %111 = arith.maximumf %109, %110 : vector<8x16xf32>
    %112 = arith.addf %106, %111 : vector<8x16xf32>
    %113 = vector.shape_cast %11 : vector<1x32x16xf32> to vector<32x16xf32>
    %cst_112 = arith.constant dense<0.000000e+00> : vector<8x16xf32>
    %114 = tpu.matmul %87, %113, %cst_112 {dimension_numbers = #tpu.dot_dimension_numbers<[1], [0], [0], [1], [0, 0, 1, 1], [], []>} : vector<8x32xf32>, vector<32x16xf32>, vector<8x16xf32> -> vector<8x16xf32>
    %115 = arith.addf %114, %95 : vector<8x16xf32>
    %cst_113 = arith.constant 0.000000e+00 : f32
    %116 = vector.broadcast %cst_113 : f32 to vector<8x16xf32>
    %117 = arith.maximumf %115, %116 : vector<8x16xf32>
    %118 = vector.shape_cast %86 : vector<1x32x16xf32> to vector<32x16xf32>
    %cst_114 = arith.constant dense<0.000000e+00> : vector<8x16xf32>
    %119 = tpu.matmul %87, %118, %cst_114 {dimension_numbers = #tpu.dot_dimension_numbers<[1], [0], [0], [1], [0, 0, 1, 1], [], []>} : vector<8x32xf32>, vector<32x16xf32>, vector<8x16xf32> -> vector<8x16xf32>
    %120 = arith.addf %119, %95 : vector<8x16xf32>
    %cst_115 = arith.constant 0.000000e+00 : f32
    %121 = vector.broadcast %cst_115 : f32 to vector<8x16xf32>
    %122 = arith.maximumf %120, %121 : vector<8x16xf32>
    %123 = arith.addf %117, %122 : vector<8x16xf32>
    %cst_116 = arith.constant dense<0.000000e+00> : vector<32x16xf32>
    %124 = tpu.matmul %88, %112, %cst_116 {dimension_numbers = #tpu.dot_dimension_numbers<[1], [0], [0], [1], [0, 0, 1, 1], [], []>} : vector<32x8xf32>, vector<8x16xf32>, vector<32x16xf32> -> vector<32x16xf32>
    %125 = arith.addf %124, %98 : vector<32x16xf32>
    %126 = arith.negf %125 : vector<32x16xf32>
    %127 = math.exp %126 : vector<32x16xf32>
    %cst_117 = arith.constant 1.000000e+00 : f32
    %128 = vector.broadcast %cst_117 : f32 to vector<32x16xf32>
    %129 = arith.addf %128, %127 : vector<32x16xf32>
    %130 = arith.divf %128, %129 : vector<32x16xf32>
    %cst_118 = arith.constant dense<0.000000e+00> : vector<32x16xf32>
    %131 = tpu.matmul %89, %123, %cst_118 {dimension_numbers = #tpu.dot_dimension_numbers<[1], [0], [0], [1], [0, 0, 1, 1], [], []>} : vector<32x8xf32>, vector<8x16xf32>, vector<32x16xf32> -> vector<32x16xf32>
    %132 = arith.addf %131, %101 : vector<32x16xf32>
    %133 = arith.negf %132 : vector<32x16xf32>
    %134 = math.exp %133 : vector<32x16xf32>
    %cst_119 = arith.constant 1.000000e+00 : f32
    %135 = vector.broadcast %cst_119 : f32 to vector<32x16xf32>
    %136 = arith.addf %135, %134 : vector<32x16xf32>
    %137 = arith.divf %135, %136 : vector<32x16xf32>
    %cst_120 = arith.constant dense<0.000000e+00> : vector<32x256xf32>
    %138 = tpu.matmul %130, %0, %cst_120 {dimension_numbers = #tpu.dot_dimension_numbers<[1], [0], [0], [1], [0, 0, 1, 1], [], []>} : vector<32x16xf32>, vector<16x256xf32>, vector<32x256xf32> -> vector<32x256xf32>
    %cst_121 = arith.constant dense<0.000000e+00> : vector<32x256xf32>
    %139 = tpu.matmul %137, %1, %cst_121 {dimension_numbers = #tpu.dot_dimension_numbers<[1], [0], [0], [1], [0, 0, 1, 1], [], []>} : vector<32x16xf32>, vector<16x256xf32>, vector<32x256xf32> -> vector<32x256xf32>
    %c0_122 = arith.constant 0 : index
    %c0_123 = arith.constant 0 : index
    %c0_124 = arith.constant 0 : index
    %140 = vector.load %arg1[%c0_122, %c0_123, %c0_124] : memref<1x32x256xf32, #tpu.memory_space<vmem>>, vector<1x32x256xf32>
    %141 = vector.shape_cast %140 : vector<1x32x256xf32> to vector<32x256xf32>
    %142 = arith.mulf %141, %138 : vector<32x256xf32>
    %143 = arith.mulf %142, %139 : vector<32x256xf32>
    %c0_125 = arith.constant 0 : index
    %c0_126 = arith.constant 0 : index
    %c0_127 = arith.constant 0 : index
    %144 = vector.load %arg10[%c0_125, %c0_126, %c0_127] : memref<1x32x256xf32, #tpu.memory_space<vmem>>, vector<1x32x256xf32>
    %145 = vector.shape_cast %144 : vector<1x32x256xf32> to vector<32x256xf32>
    %146 = vector.shape_cast %143 : vector<32x256xf32> to vector<1x32x256xf32>
    tpu.vector_store %arg10[%c0_125, %c0_126, %c0_127], %146 {strides = array<i32>} : memref<1x32x256xf32, #tpu.memory_space<vmem>>, vector<1x32x256xf32>,
    return
  }
  func.func @transform_0(%arg0: i32) -> (i32, i32, i32) {
    %c0_i32 = arith.constant 0 : i32
    %c0_i32_0 = arith.constant 0 : i32
    %c0_i32_1 = arith.constant 0 : i32
    return %arg0, %c0_i32, %c0_i32_0 : i32, i32, i32
  }
  func.func @transform_1(%arg0: i32) -> (i32, i32) {
    %c0_i32 = arith.constant 0 : i32
    %c0_i32_0 = arith.constant 0 : i32
    %c0_i32_1 = arith.constant 0 : i32
    return %c0_i32, %c0_i32_0 : i32, i32
  }
  func.func @transform_2(%arg0: i32) -> (i32, i32) {
    %c0_i32 = arith.constant 0 : i32
    %c0_i32_0 = arith.constant 0 : i32
    %c0_i32_1 = arith.constant 0 : i32
    return %c0_i32, %c0_i32_0 : i32, i32
  }
  func.func @transform_3(%arg0: i32) -> (i32, i32) {
    %c0_i32 = arith.constant 0 : i32
    %c0_i32_0 = arith.constant 0 : i32
    %c0_i32_1 = arith.constant 0 : i32
    return %c0_i32, %c0_i32_0 : i32, i32
  }
  func.func @transform_4(%arg0: i32) -> (i32, i32) {
    %c0_i32 = arith.constant 0 : i32
    %c0_i32_0 = arith.constant 0 : i32
    %c0_i32_1 = arith.constant 0 : i32
    return %c0_i32, %c0_i32_0 : i32, i32
  }
  func.func @transform_5(%arg0: i32) -> (i32, i32) {
    %c0_i32 = arith.constant 0 : i32
    %c0_i32_0 = arith.constant 0 : i32
    %c0_i32_1 = arith.constant 0 : i32
    return %c0_i32, %c0_i32_0 : i32, i32
  }
  func.func @transform_6(%arg0: i32) -> (i32, i32) {
    %c0_i32 = arith.constant 0 : i32
    %c0_i32_0 = arith.constant 0 : i32
    %c0_i32_1 = arith.constant 0 : i32
    return %c0_i32, %c0_i32_0 : i32, i32
  }
  func.func @transform_7(%arg0: i32) -> (i32, i32) {
    %c0_i32 = arith.constant 0 : i32
    %c0_i32_0 = arith.constant 0 : i32
    %c0_i32_1 = arith.constant 0 : i32
    return %c0_i32, %c0_i32_0 : i32, i32
  }
  func.func @transform_8(%arg0: i32) -> (i32, i32) {
    %c0_i32 = arith.constant 0 : i32
    %c0_i32_0 = arith.constant 0 : i32
    %c0_i32_1 = arith.constant 0 : i32
    return %c0_i32, %c0_i32_0 : i32, i32
  }
  func.func @transform_9(%arg0: i32) -> (i32, i32, i32) {
    %c0_i32 = arith.constant 0 : i32
    %c0_i32_0 = arith.constant 0 : i32
    %c0_i32_1 = arith.constant 0 : i32
    return %arg0, %c0_i32, %c0_i32_0 : i32, i32, i32
  }
}

</mosaic_0001>

<bundles_post_ra>
// kernel: tpu_custom_call.1
= control target key start
LH: loop header
LB: loop body
LE: loop exit
PB: predicated region body
PF: predicated region fallthrough
CT: control target
= control target key end

     0   :  { %14 = vsyncpa [#allocation4], 0  ;;  %s3040_s0 = inlined_call_operand.vmem [shape: f32[2,32,256], index: 0, kind: input, shape index: {}]   ;;  %s3041_s1 = inlined_call_operand.hbm [shape: f32[8,32], index: 1, kind: input, shape index: {}]   ;;  %s3042_s2 = inlined_call_operand.vmem [shape: f32[8,1], index: 2, kind: input, shape index: {}]   ;;  %s3043_s3 = inlined_call_operand.vmem [shape: f32[32,8], index: 3, kind: input, shape index: {}]   ;;  %s3044_s4 = inlined_call_operand.vmem [shape: f32[32,1], index: 4, kind: input, shape index: {}]   ;;  %s3045_s5 = inlined_call_operand.vmem [shape: f32[32,8], index: 5, kind: input, shape index: {}]   ;;  %s3046_s6 = inlined_call_operand.vmem [shape: f32[32,1], index: 6, kind: input, shape index: {}]   ;;  %s3047_s7 = inlined_call_operand.vmem [shape: f32[16,256], index: 7, kind: input, shape index: {}]   ;;  %s3048_s8 = inlined_call_operand.hbm [shape: f32[16,256], index: 8, kind: input, shape index: {}]   ;;  %s3049_s9 = inlined_call_operand.hbm [shape: f32[2,32,256], index: 9, kind: output, shape index: {}]  }
   0x1   :  { %15 = vsyncpa [#allocation7], 0 }
   0x2   :  { %16 = vsyncpa [#allocation5], 0 }
   0x3   :  { %18 = vsyncpa [#allocation5 + $0x1], 0  ;;  %s2365_s30 = smov 0   ;;  %s2367_s10 = smov 0  }
   0x4   :  { %s2369_s11 = smov 0   ;;  %s2371_s12 = smov 0  }
   0x5 LB: > { %s2386_s13 = sadd.s32 4294967295, %s2301_s12   ;;  %s1934_s14 = sadd.s32 4294967294, %s2301_s12   ;;  %s2301_s12 = sphi %s2371_s12, %s3067_s12   ;;  %s2297_s11 = sphi %s2369_s11, %s3066_s11   ;;  %s2293_s10 = sphi %s2367_s10, %s3065_s10   ;;  %s2289_s30 = sphi %s2365_s30, %s3064_s30  }
   0x6   : > { %s2390_s15 = sadd.s32 1, %s2301_s12   ;;  %s225_s16 = sadd.s32 1, %s2297_s11 }
   0x7   : > { %s222_s17 = ssub.s32 %s2301_s12, %s2390_s15  ;;  %p235_p0 = scmp.ne.s32.totalorder %s2297_s11, %s2293_s10 }
   0x8   : > { %p223_p1 = scmp.eq.s32.totalorder %s222_s17, 0  ;;  %p236_p2 = scmp.eq.s32.totalorder %s2386_s13, 1 }
   0x9   : > { %p241_p3 = scmp.ne.s32.totalorder %s2293_s10, %s2289_s30  ;;  %p242_p4 = scmp.eq.s32.totalorder %s1934_s14, 1 }
   0xa   : > { %s2401_s18 = scalar_select %p223_p1, %s2297_s11, %s225_s16  }
   0xb   : > { %p2403_p5 = por %p236_p2, %p235_p0  ;;  %p2407_p6 = por %p242_p4, %p241_p3 }
   0xc   : > { %p1935_p7 = scmp.ge.s32.totalorder %s2301_s12, 1  ;;  %p249_p8 = scmp.lt.s32.totalorder %s2301_s12, 3 }
   0xd   : > { %s3053_s19 = scalar_select %p2403_p5, 1, 0 }
   0xe   : > { %s3054_s20 = scalar_select %p2407_p6, 1, 0 }
   0xf   : > { %p3050_p9 = scmp.eq.s32.totalorder %s2386_s13, 0  ;;  %p2414_p10 = pnand %p1935_p7, %p249_p8 }
  0x10   : > { %s2303_s22 = smov [#allocation3]   ;;  %s2304_s24 = smov [#allocation6]  }
  0x11   : > { %s3055_s21 = scalar_select %p2414_p10, 1, 0 }
  0x12   : > { %s262_s23 = sshll.u32 %s2303_s22, 4  ;;  %p2080_p11 = pneg %p2414_p10  ;;  %s263_s23 = int_to_ptr.vmem [resolvable:$true] %s262_s23 }
  0x13   : > { %s290_s25 = sshll.u32 %s2304_s24, 4  ;;  %s2192_s27 = scalar_lea.vmem %s263_s23, 128  ;;  %s291_s25 = int_to_ptr.vmem [resolvable:$true] %s290_s25 }
  0x14   : > { %p2422_p12 = pnand %p3050_p9, %p2080_p11  ;;  %p2193_p0 = scmp.ne.s32.totalorder %s263_s23, %s2192_s27 }
  0x15   : > { %p2200_p3 = scmp.lt.s32.totalorder %s263_s23, %s263_s23  ;;  %p2201_p4 = scmp.lt.s32.totalorder %s2192_s27, %s2192_s27 }
  0x16   : > { %p2183_p13 = pneg %p2422_p12 }
  0x17   : > { %p2202_p7 = por %p2201_p4, %p2200_p3 }
  0x18   : > { %p2195_p1 = pnand %p2193_p0, %p2183_p13 }
  0x1a   : > { %p2196_p2 = pneg %p2195_p1 }
  0x1c   : > { %p2203_p8 = pnand %p2202_p7, %p2196_p2 }
  0x1e   : > { %2206 = shalt.err (!%p2203_p8)
}
  0x1f   : > { %2083 = dma.hbm_to_vmem [thread:$0]  (!%p2422_p12), %s3041_s1, 128, %s263_s23, [#allocation4]  }
  0x20   : > { %s2218_s14 = scalar_lea.vmem %s291_s25, 512  ;;  %p2226_p0 = scmp.lt.s32.totalorder %s291_s25, %s291_s25 }
  0x21   : > { %p2219_p11 = scmp.ne.s32.totalorder %s291_s25, %s2218_s14  ;;  %p2227_p1 = scmp.lt.s32.totalorder %s2218_s14, %s2218_s14 }
  0x23   : > { %p2221_p9 = pnand %p2219_p11, %p2183_p13  ;;  %p2228_p5 = por %p2227_p1, %p2226_p0 }
  0x25   : > { %p2222_p6 = pneg %p2221_p9 }
  0x27   : > { %p2229_p10 = pnand %p2228_p5, %p2222_p6 }
  0x29   : > { %2232 = shalt.err (!%p2229_p10)
}
  0x2a   : > { %s2305_s16 = smov 256   ;;  %s2306_s17 = smov 16  }
  0x2b   : > { %2086 = dma.hbm_to_vmem [thread:$0]  (!%p2422_p12), %s3048_s8, 512, %s291_s25, [#allocation7], %s2305_s16, %s2305_s16, %s2306_s17  }
  0x2c   : > { %p3057_p2 = scmp.ne.s32.totalorder %s3055_s21, 0 }
  0x2d   : > { %p3058_p3 = scmp.eq.s32.totalorder (!%p3057_p2), %s2386_s13, 0 }
  0x2e   : > { %314 = sbr.rel (%p3057_p2) target bundleno = 1108 (0x454), region = 56 }
  0x33   : > { %2276 = dma.done.wait (%p3058_p3), [#allocation4], 128   ;;  %p3059_p9 = pmov %p3058_p3 }
  0x34   : > { %p3060_p5 = pmov %p3058_p3 }
  0x35   : > { %2278 = vsyncadd (%p3059_p9), [#allocation4], 4294967168 }
  0x36   : > { %2280 = dma.done.wait (%p3060_p5), [#allocation7], 512   ;;  %p3061_p6 = pmov %p3058_p3 }
  0x37   : > { %p354_p10 = scmp.lt.s32.totalorder %s2386_s13, 1  ;;  %s2307_s28 = smov 16   ;;  %v362_v8 = vld [vmem:[%s3047_s7 + $0x18] sm:$0xff]  ;;  %v361_v9 = vld [vmem:[%s3047_s7 + $0x10] sm:$0xff]  ;;  %v360_v10 = vld [vmem:[%s3047_s7 + $0x8] sm:$0xff]  ;;  %vm557_vm0 = vcmask 130048   ;;  %v917_v49 = vlaneseq }
  0x38   : > { %2282 = vsyncadd (%p3061_p6), [#allocation7], 4294966784  ;;  %403 = vmatprep.subr.mxu0 %v362_v8  ;;  %v366_v11 = vld [vmem:[#allocation6 + $0x18] sm:$0xff]  ;;  %v365_v12 = vld [vmem:[#allocation6 + $0x10] sm:$0xff]  ;;  %vm579_vm1 = vcmask 261248   ;;  %vm601_vm2 = vcmask 392448  }
  0x39   : > { %s355_s23 = scalar_select %p354_p10, %s2386_s13, 1  ;;  %404 = vmatpush1.xpose.msra.mxu0 %v361_v9  ;;  %v364_v13 = vld [vmem:[#allocation6 + $0x8] sm:$0xff]  ;;  %v359_v14 = vld [vmem:[%s3047_s7] sm:$0xff]  ;;  %488 = vmatprep.subr.mxu1 %v366_v11  ;;  %v363_v15 = vld [vmem:[#allocation6] sm:$0xff]  ;;  %vm623_vm3 = vcmask 523648   ;;  %vm645_vm4 = vcmask 654848  }
  0x3a   : > { %405 = vmatprep.subr.mxu0 %v360_v10  ;;  %489 = vmatpush1.xpose.msra.mxu1 %v365_v12  ;;  %vm667_vm5 = vcmask 786048   ;;  %vm689_vm6 = vcmask 917248   ;;  %vm711_vm7 = vcmask 1048448   ;;  %v2595_v50 = vand.u32 127, %v917_v49  ;;  %s2308_s26 = smov 32   ;;  %s2311_s21 = smov 64  }
  0x3b   : > { %s1978_s25 = sshll.u32 %s355_s23, 6  ;;  %490 = vmatprep.subr.mxu1 %v364_v13  ;;  %vm570_vm9 = vcmask 7168   ;;  %vm592_vm10 = vcmask 15368   ;;  %vm614_vm11 = vcmask 23568   ;;  %vm636_vm12 = vcmask 31768   ;;  %s351_s16 = sand.u32 1, %s2293_s10  }
  0x3c   : > { %s2459_s27 = scalar_lea.vmem %s3040_s0, %s1978_s25  ;;  %vm919_vm8 = vcmp.lt.s32.totalorder %v2595_v50, 16  ;;  %vm658_vm13 = vcmask 39968   ;;  %vm680_vm14 = vcmask 48168   ;;  %vm702_vm15 = vcmask 56368   ;;  %s1942_s17 = sshll.u32 %s351_s16, 6 }
  0x3d   : > { %v2462_v0 = vld [vmem:[%s2459_s27 + $0x30] sm:$0xff]  ;;  %v2465_v1 = vld [vmem:[%s2459_s27 + $0x20] sm:$0xff]  ;;  %v2472_v2 = vld [vmem:[%s2459_s27 + $0x38] sm:$0xff]  ;;  %406 = vmatpush1.xpose.msra.mxu0 %v359_v14  ;;  %s2974_s22 = scalar_lea.vmem [#allocation8], %s1942_s17  ;;  %s1979_s23 = sshll.u32 %s2386_s13, 10 }
  0x3e   : > { %907 = vrot.lane.b32.xlu0 %v2462_v0, %s2307_s28  ;;  %905 = vrot.lane.b32.xlu1 %v2465_v1, %s2307_s28  ;;  %v2475_v3 = vld [vmem:[%s2459_s27 + $0x28] sm:$0xff]  ;;  %v2487_v5 = vld [vmem:[%s2459_s27 + $0x18] sm:$0xff]  ;;  %v567_v16 = vsel %vm557_vm0, %v2462_v0, -inf  ;;  %v564_v17 = vsel %vm557_vm0, %v2465_v1, -inf  ;;  %v589_v18 = vsel %vm579_vm1, %v2462_v0, -inf  ;;  %v611_v19 = vsel %vm601_vm2, %v2462_v0, -inf }
  0x3f   : > { %v2478_v4 = vld [vmem:[%s2459_s27 + $0x8] sm:$0xff]  ;;  %v2490_v6 = vld [vmem:[%s2459_s27 + $0x10] sm:$0xff]  ;;  %v2497_v7 = vld [vmem:[%s2459_s27] sm:$0xff]  ;;  %491 = vmatpush1.xpose.msra.mxu1 %v363_v15  ;;  %v586_v20 = vsel %vm579_vm1, %v2465_v1, -inf  ;;  %v633_v21 = vsel %vm623_vm3, %v2462_v0, -inf  ;;  %v608_v23 = vsel %vm601_vm2, %v2465_v1, -inf }
  0x40   : > { %439 = vmatprep.mubr.f32.mxu0 %v2478_v4  ;;  %524 = vmatprep.mubr.f32.mxu1 %v2478_v4  ;;  %v561_v22 = vsel %vm557_vm0, %v2490_v6, -inf  ;;  %v655_v24 = vsel %vm645_vm4, %v2462_v0, -inf  ;;  %v583_v25 = vsel %vm579_vm1, %v2490_v6, -inf  ;;  %v630_v26 = vsel %vm623_vm3, %v2465_v1, -inf  ;;  %s1850_s24 = sshll.u32 %s2974_s22, 4  ;;  %p3062_p13 = scmp.ne.s32.totalorder %s3053_s19, 0  ;;  %s2988_s24 = int_to_ptr.vmem [resolvable:$true] %s1850_s24 }
  0x41   : > { %440 = vmatmul.mubr.f32.vlgmr.msra.gmra.mxu0 %v2497_v7  ;;  %v677_v27 = vsel %vm667_vm5, %v2462_v0, -inf  ;;  %v558_v28 = vsel %vm557_vm0, %v2497_v7, -inf  ;;  %v605_v29 = vsel %vm601_vm2, %v2490_v6, -inf  ;;  %v652_v30 = vsel %vm645_vm4, %v2465_v1, -inf  ;;  %s2233_s13 = scalar_lea.vmem %s2988_s24, 1024  ;;  %s2313_s29 = smov [#allocation8]  }
  0x42   : > { %915 = vrot.lane.b32.xlu0 %v2472_v2, %s2307_s28  ;;  %913 = vrot.lane.b32.xlu1 %v2475_v3, %s2307_s28  ;;  %v699_v31 = vsel %vm689_vm6, %v2462_v0, -inf  ;;  %v580_v32 = vsel %vm579_vm1, %v2497_v7, -inf  ;;  %v627_v33 = vsel %vm623_vm3, %v2490_v6, -inf  ;;  %v674_v34 = vsel %vm667_vm5, %v2465_v1, -inf  ;;  %p2234_p12 = scmp.ne.s32.totalorder %s2988_s24, %s2233_s13  ;;  %s2237_s14 = sshll.u32 %s2313_s29, 4  ;;  %s2238_s14 = int_to_ptr.vmem [resolvable:$false] %s2237_s14 }
  0x43   : > { %444 = vmatprep.mubr.f32.mxu0 %v2487_v5  ;;  %525 = vmatmul.mubr.f32.vlgmr.msra.gmra.mxu1 %v2497_v7  ;;  %v721_v35 = vsel %vm711_vm7, %v2462_v0, -inf  ;;  %v602_v36 = vsel %vm601_vm2, %v2497_v7, -inf  ;;  %v649_v37 = vsel %vm645_vm4, %v2490_v6, -inf  ;;  %v696_v38 = vsel %vm689_vm6, %v2465_v1, -inf  ;;  %s2239_s17 = scalar_lea.vmem %s2238_s14, 2048  ;;  %p2240_p8 = scmp.lt.s32.totalorder %s2988_s24, %s2238_s14 }
  0x44   : > { %529 = vmatprep.mubr.f32.mxu1 %v2487_v5  ;;  %v742_v39 = vsel %vm557_vm0, %v2472_v2, -inf  ;;  %v624_v40 = vsel %vm623_vm3, %v2497_v7, -inf  ;;  %v671_v41 = vsel %vm667_vm5, %v2490_v6, -inf  ;;  %v718_v42 = vsel %vm711_vm7, %v2465_v1, -inf  ;;  %p2235_p4 = pnand %p2234_p12, %p3062_p13  ;;  %p2241_p11 = scmp.lt.s32.totalorder %s2239_s17, %s2233_s13 }
  0x45   : > { %445 = vmatmul.mubr.f32.gmra.mxu0 %v2490_v6  ;;  %v763_v43 = vsel %vm579_vm1, %v2472_v2, -inf  ;;  %v646_v44 = vsel %vm645_vm4, %v2497_v7, -inf  ;;  %v693_v45 = vsel %vm689_vm6, %v2490_v6, -inf  ;;  %v739_v46 = vsel %vm557_vm0, %v2475_v3, -inf }
  0x46   : > { %911 = vrot.lane.b32.xlu1 %v2487_v5, %s2307_s28  ;;  %903 = vrot.lane.b32.xlu0 %v2490_v6, %s2307_s28  ;;  %v784_v47 = vsel %vm601_vm2, %v2472_v2, -inf  ;;  %v668_v48 = vsel %vm667_vm5, %v2497_v7, -inf  ;;  %p2236_p7 = pneg %p2235_p4  ;;  %p2242_p0 = por %p2241_p11, %p2240_p8 }
  0x47   : > { %449 = vmatprep.mubr.f32.mxu0 %v2475_v3  ;;  %530 = vmatmul.mubr.f32.gmra.mxu1 %v2490_v6 }
  0x48   : > { %534 = vmatprep.mubr.f32.mxu1 %v2475_v3  ;;  %p2243_p1 = pnand %p2242_p0, %p2236_p7 }
  0x49   : > { %450 = vmatmul.mubr.f32.gmra.mxu0 %v2465_v1 }
  0x4a   : > { %909 = vrot.lane.b32.xlu1 %v2478_v4, %s2307_s28  ;;  %901 = vrot.lane.b32.xlu0 %v2497_v7, %s2307_s28 }
  0x4b   : > { %454 = vmatprep.mubr.f32.mxu0 %v2472_v2  ;;  %535 = vmatmul.mubr.f32.gmra.mxu1 %v2465_v1 }
  0x4c   : > { %539 = vmatprep.mubr.f32.mxu1 %v2472_v2 }
  0x4d   : > { %455 = vmatmul.mubr.f32.gmra.mxu0 %v2462_v0 }
  0x4f   : > { %540 = vmatmul.mubr.f32.gmra.mxu1 %v2462_v0 }
  0x69   : > { %568 = vmax.xlane.f32.xlu0 %v567_v16 }
  0x6d   : > { %565 = vmax.xlane.f32.xlu0 %v564_v17  ;;  %v715_v17 = vsel %vm711_vm7, %v2490_v6, -inf }
  0x6e   : > { %590 = vmax.xlane.f32.xlu1 %v589_v18  ;;  %v760_v18 = vsel %vm579_vm1, %v2475_v3, -inf }
  0x71   : > { %612 = vmax.xlane.f32.xlu0 %v611_v19  ;;  %v805_v19 = vsel %vm623_vm3, %v2472_v2, -inf }
  0x72   : > { %587 = vmax.xlane.f32.xlu1 %v586_v20  ;;  %v690_v20 = vsel %vm689_vm6, %v2497_v7, -inf }
  0x75   : > { %634 = vmax.xlane.f32.xlu0 %v633_v21  ;;  %v736_v21 = vsel %vm557_vm0, %v2487_v5, -inf }
  0x76   : > { %562 = vmax.xlane.f32.xlu1 %v561_v22 }
  0x79   : > { %609 = vmax.xlane.f32.xlu0 %v608_v23  ;;  %v826_v23 = vsel %vm645_vm4, %v2472_v2, -inf }
  0x7a   : > { %656 = vmax.xlane.f32.xlu1 %v655_v24  ;;  %v712_v24 = vsel %vm711_vm7, %v2497_v7, -inf }
  0x7d   : > { %584 = vmax.xlane.f32.xlu0 %v583_v25 }
  0x7e   : > { %631 = vmax.xlane.f32.xlu1 %v630_v26 }
  0x81   : > { %678 = vmax.xlane.f32.xlu0 %v677_v27  ;;  %v757_v27 = vsel %vm579_vm1, %v2487_v5, -inf }
  0x82   : > { %559 = vmax.xlane.f32.xlu1 %v558_v28  ;;  %v802_v28 = vsel %vm623_vm3, %v2475_v3, -inf }
  0x85   : > { %606 = vmax.xlane.f32.xlu0 %v605_v29 }
  0x86   : > { %653 = vmax.xlane.f32.xlu1 %v652_v30  ;;  %v847_v30 = vsel %vm667_vm5, %v2472_v2, -inf }
  0x89   : > { %700 = vmax.xlane.f32.xlu0 %v699_v31  ;;  %v733_v31 = vsel %vm557_vm0, %v2478_v4, -inf }
  0x8a   : > { %581 = vmax.xlane.f32.xlu1 %v580_v32 }
  0x8d   : > { %628 = vmax.xlane.f32.xlu0 %v627_v33 }
  0x8e   : > { %675 = vmax.xlane.f32.xlu1 %v674_v34  ;;  %v778_v34 = vsel %vm601_vm2, %v2487_v5, -inf }
  0x91   : > { %722 = vmax.xlane.f32.xlu0 %v721_v35  ;;  %v823_v35 = vsel %vm645_vm4, %v2475_v3, -inf }
  0x92   : > { %603 = vmax.xlane.f32.xlu1 %v602_v36 }
  0x95   : > { %650 = vmax.xlane.f32.xlu0 %v649_v37 }
  0x96   : > { %697 = vmax.xlane.f32.xlu1 %v696_v38  ;;  %v868_v38 = vsel %vm689_vm6, %v2472_v2, -inf }
  0x99   : > { %743 = vmax.xlane.f32.xlu0 %v742_v39  ;;  %v754_v39 = vsel %vm579_vm1, %v2478_v4, -inf  ;;  %vm724_vm1 = vcmask 64568  }
  0x9a   : > { %625 = vmax.xlane.f32.xlu1 %v624_v40 }
  0x9d   : > { %672 = vmax.xlane.f32.xlu0 %v671_v41 }
  0x9e   : > { %719 = vmax.xlane.f32.xlu1 %v718_v42  ;;  %v799_v42 = vsel %vm623_vm3, %v2487_v5, -inf }
  0xa1   : > { %764 = vmax.xlane.f32.xlu0 %v763_v43  ;;  %v844_v43 = vsel %vm667_vm5, %v2475_v3, -inf }
  0xa2   : > { %647 = vmax.xlane.f32.xlu1 %v646_v44 }
  0xa5   : > { %694 = vmax.xlane.f32.xlu0 %v693_v45 }
  0xa6   : > { %740 = vmax.xlane.f32.xlu1 %v739_v46  ;;  %v889_v46 = vsel %vm711_vm7, %v2472_v2, -inf }
  0xa9   : > { %785 = vmax.xlane.f32.xlu0 %v784_v47  ;;  %v775_v47 = vsel %vm601_vm2, %v2478_v4, -inf }
  0xaa   : > { %669 = vmax.xlane.f32.xlu1 %v668_v48 }
  0xb0   : > { %v908_v51 = vpop.permute.xlu0 %907  ;;  %v906_v52 = vpop.permute.xlu1 %905 }
  0xb4   : > { %v916_v53 = vpop.permute.xlu0 %915  ;;  %v914_v54 = vpop.permute.xlu1 %913 }
  0xb5   : > { %v923_v55 = vsel %vm919_vm8, %v908_v51, %v916_v53  ;;  %v927_v59 = vsel %vm919_vm8, %v916_v53, %v908_v51  ;;  %v922_v60 = vsel %vm919_vm8, %v906_v52, %v914_v54  ;;  %v926_v63 = vsel %vm919_vm8, %v914_v54, %v906_v52 }
  0xb6   : > { %v2601_v56 = vmax.f32 %v2472_v2, %v923_v55  ;;  %v2609_v61 = vmax.f32 %v2462_v0, %v927_v59  ;;  %v2612_v62 = vmax.f32 %v2475_v3, %v922_v60  ;;  %v2621_v11 = vmax.f32 %v2465_v1, %v926_v63 }
  0xb7   : > { %v820_v51 = vsel %vm645_vm4, %v2487_v5, -inf  ;;  %v865_v2 = vsel %vm689_vm6, %v2475_v3, -inf  ;;  %v796_v54 = vsel %vm623_vm3, %v2478_v4, -inf  ;;  %v886_v63 = vsel %vm711_vm7, %v2475_v3, -inf }
  0xb8   : > { %v912_v57 = vpop.permute.xlu1 %911  ;;  %v904_v58 = vpop.permute.xlu0 %903  ;;  %vm766_vm3 = vcmask 80968  }
  0xb9   : > { %v921_v8 = vsel %vm919_vm8, %v904_v58, %v912_v57  ;;  %v925_v12 = vsel %vm919_vm8, %v912_v57, %v904_v58  ;;  %v841_v57 = vsel %vm667_vm5, %v2487_v5, -inf }
  0xba   : > { %v2624_v0 = vmax.f32 %v2487_v5, %v921_v8  ;;  %v2633_v14 = vmax.f32 %v2490_v6, %v925_v12  ;;  %v781_v6 = vsel %vm601_vm2, %v2475_v3, -inf  ;;  %v838_v3 = vsel %vm667_vm5, %v2478_v4, -inf }
  0xbb   : > { %950 = vrot.lane.b32.xlu1 %v2601_v56, %s2308_s26  ;;  %vm745_vm2 = vcmask 72768   ;;  %vm1069_vm5 = vcmask 261120  }
  0xbc   : > { %v910_v9 = vpop.permute.xlu1 %909  ;;  %v902_v10 = vpop.permute.xlu0 %901 }
  0xbd   : > { %v920_v13 = vsel %vm919_vm8, %v902_v10, %v910_v9  ;;  %v924_v1 = vsel %vm919_vm8, %v910_v9, %v902_v10  ;;  %v817_v9 = vsel %vm645_vm4, %v2478_v4, -inf  ;;  %vm2310_vm4 = vmmov 0  }
  0xbe   : > { %v2636_v15 = vmax.f32 %v2478_v4, %v920_v13  ;;  %v2643_v16 = vmax.f32 %v2497_v7, %v924_v1  ;;  %v862_v1 = vsel %vm689_vm6, %v2487_v5, -inf  ;;  %vm808_vm8 = vcmask 97368  }
  0xbf   : > { %948 = vrot.lane.b32.xlu1 %v2612_v62, %s2308_s26  ;;  %942 = vrot.lane.b32.xlu0 %v2609_v61, %s2308_s26 }
  0xc3   : > { %946 = vrot.lane.b32.xlu1 %v2624_v0, %s2308_s26  ;;  %940 = vrot.lane.b32.xlu0 %v2621_v11, %s2308_s26 }
  0xc7   : > { %938 = vrot.lane.b32.xlu0 %v2633_v14, %s2308_s26  ;;  %944 = vrot.lane.b32.xlu1 %v2636_v15, %s2308_s26 }
  0xcb   : > { %936 = vrot.lane.b32.xlu0 %v2643_v16, %s2308_s26  ;;  %s2994_s26 = scalar_lea.hbm %s3049_s9, %s1979_s23 }
  0xea   : > { %716 = vmax.xlane.f32.xlu0 %v715_v17 }
  0xeb   : > { %761 = vmax.xlane.f32.xlu1 %v760_v18 }
  0xee   : > { %806 = vmax.xlane.f32.xlu0 %v805_v19 }
  0xef   : > { %691 = vmax.xlane.f32.xlu1 %v690_v20 }
  0xf2   : > { %737 = vmax.xlane.f32.xlu0 %v736_v21  ;;  %v569_v22 = vpop.xlane.xlu0 %568  ;;  %v883_v21 = vsel %vm711_vm7, %v2487_v5, -inf }
  0xf3   : > { %574 = vst.msk [vmem:[#allocation2 + $0x18] sm:$0xff] %vm570_vm9, %v569_v22  ;;  %782 = vmax.xlane.f32.xlu1 %v781_v6  ;;  %v859_v22 = vsel %vm689_vm6, %v2478_v4, -inf  ;;  %vm787_vm6 = vcmask 89168  }
  0xf6   : > { %827 = vmax.xlane.f32.xlu0 %v826_v23  ;;  %v566_v25 = vpop.xlane.xlu0 %565 }
  0xf7   : > { %573 = vst.msk [vmem:[#allocation2 + $0x10] sm:$0xff] %vm570_vm9, %v566_v25  ;;  %v591_v26 = vpop.xlane.xlu1 %590  ;;  %713 = vmax.xlane.f32.xlu1 %v712_v24 }
  0xf8   : > { %596 = vst.msk [vmem:[#allocation2 + $0x18] sm:$0xff] %vm592_vm10, %v591_v26 }
  0xfa   : > { %758 = vmax.xlane.f32.xlu0 %v757_v27  ;;  %v613_v29 = vpop.xlane.xlu0 %612 }
  0xfb   : > { %618 = vst.msk [vmem:[#allocation2 + $0x18] sm:$0xff] %vm614_vm11, %v613_v29  ;;  %v588_v7 = vpop.xlane.xlu1 %587  ;;  %803 = vmax.xlane.f32.xlu1 %v802_v28  ;;  %v2309_v28 = vmov 0.0  }
  0xfc   : > { %595 = vst.msk [vmem:[#allocation2 + $0x10] sm:$0xff] %vm592_vm10, %v588_v7  ;;  %2010 = vmatprep.subr.mxu0 %v2309_v28  ;;  %v880_v7 = vsel %vm711_vm7, %v2478_v4, -inf  ;;  %2021 = vmatprep.subr.mxu1 %v2309_v28  ;;  %vm952_vm7 = vcmp.lt.s32.totalorder %v2595_v50, 32 }
  0xfd   : > { %2018 = vmatprep.mubr.msk.f32.mxu0 %vm2310_vm4, %v2309_v28  ;;  %2029 = vmatprep.mubr.msk.f32.mxu1 %vm2310_vm4, %v2309_v28 }
  0xfe   : > { %848 = vmax.xlane.f32.xlu0 %v847_v30  ;;  %v635_v32 = vpop.xlane.xlu0 %634 }
  0xff   : > { %640 = vst.msk [vmem:[#allocation2 + $0x18] sm:$0xff] %vm636_vm12, %v635_v32  ;;  %v563_v33 = vpop.xlane.xlu1 %562  ;;  %734 = vmax.xlane.f32.xlu1 %v733_v31 }
 0x100   : > { %572 = vst.msk [vmem:[#allocation2 + $0x8] sm:$0xff] %vm570_vm9, %v563_v33 }
 0x101   : > { %v441_v55 = vpop.f32.mrf.mxu0 }
 0x102   : > { %779 = vmax.xlane.f32.xlu0 %v778_v34  ;;  %v610_v36 = vpop.xlane.xlu0 %609  ;;  %v545_v32 = vmul.f32 0.0625, %v441_v55 }
 0x103   : > { %617 = vst.msk [vmem:[#allocation2 + $0x10] sm:$0xff] %vm614_vm11, %v610_v36  ;;  %v657_v37 = vpop.xlane.xlu1 %656  ;;  %824 = vmax.xlane.f32.xlu1 %v823_v35  ;;  %v443_v58 = vpop.f32.mrf.mxu0 }
 0x104   : > { %662 = vst.msk [vmem:[#allocation2 + $0x18] sm:$0xff] %vm658_vm13, %v657_v37  ;;  %v526_v24 = vpop.f32.mrf.mxu1 }
 0x105   : > { %v446_v8 = vpop.f32.mrf.mxu0 }
 0x106   : > { %869 = vmax.xlane.f32.xlu0 %v868_v38  ;;  %v585_v40 = vpop.xlane.xlu0 %584  ;;  %v528_v29 = vpop.f32.mrf.mxu1  ;;  %v546_v30 = vmul.f32 0.0625, %v446_v8 }
 0x107   : > { %594 = vst.msk [vmem:[#allocation2 + $0x8] sm:$0xff] %vm592_vm10, %v585_v40  ;;  %v632_v41 = vpop.xlane.xlu1 %631  ;;  %755 = vmax.xlane.f32.xlu1 %v754_v39  ;;  %v448_v10 = vpop.f32.mrf.mxu0 }
 0x108   : > { %639 = vst.msk [vmem:[#allocation2 + $0x10] sm:$0xff] %vm636_vm12, %v632_v41  ;;  %v531_v31 = vpop.f32.mrf.mxu1 }
 0x109   : > { %v451_v17 = vpop.f32.mrf.mxu0 }
 0x10a   : > { %800 = vmax.xlane.f32.xlu0 %v799_v42  ;;  %v679_v44 = vpop.xlane.xlu0 %678  ;;  %v547_v25 = vmul.f32 0.0625, %v451_v17  ;;  %v533_v34 = vpop.f32.mrf.mxu1  ;;  %v2745_v42 = vld [vmem:[#allocation3] sm:$0xff] }
 0x10b   : > { %684 = vst.msk [vmem:[#allocation2 + $0x18] sm:$0xff] %vm680_vm14, %v679_v44  ;;  %v560_v45 = vpop.xlane.xlu1 %559  ;;  %845 = vmax.xlane.f32.xlu1 %v844_v43  ;;  %v453_v18 = vpop.f32.mrf.mxu0 }
 0x10c   : > { %571 = vst.msk [vmem:[#allocation2] sm:$0xff] %vm570_vm9, %v560_v45  ;;  %v536_v4 = vpop.f32.mrf.mxu1  ;;  %v1015_v18 = vld [vmem:[%s3042_s2] sm:$0xff]  ;;  %vm829_vm9 = vcmask 105568  }
 0x10d   : > { %v456_v6 = vpop.f32.mrf.mxu0  ;;  %v551_v40 = vmul.f32 0.0625, %v536_v4 }
 0x10e   : > { %890 = vmax.xlane.f32.xlu0 %v889_v46  ;;  %v607_v48 = vpop.xlane.xlu0 %606  ;;  %v548_v23 = vmul.f32 0.0625, %v456_v6  ;;  %v538_v37 = vpop.f32.mrf.mxu1  ;;  %v550_v46 = vmul.f32 0.0625, %v531_v31 }
 0x10f   : > { %616 = vst.msk [vmem:[#allocation2 + $0x8] sm:$0xff] %vm614_vm11, %v607_v48  ;;  %v654_v49 = vpop.xlane.xlu1 %653  ;;  %776 = vmax.xlane.f32.xlu1 %v775_v47  ;;  %v458_v26 = vpop.f32.mrf.mxu0  ;;  %v549_v47 = vmul.f32 0.0625, %v526_v24 }
 0x110   : > { %661 = vst.msk [vmem:[#allocation2 + $0x10] sm:$0xff] %vm658_vm13, %v654_v49  ;;  %2011 = vmatpush3.msra.mxu0 %v548_v23  ;;  %v541_v39 = vpop.f32.mrf.mxu1 }
 0x111   : > { %2012 = vmatprep.subr.mxu0 %v2309_v28  ;;  %v552_v41 = vmul.f32 0.0625, %v541_v39 }
 0x112   : > { %821 = vmax.xlane.f32.xlu0 %v820_v51  ;;  %v701_v52 = vpop.xlane.xlu0 %700  ;;  %2013 = vmatpush3.msra.mxu0 %v547_v25  ;;  %v543_v44 = vpop.f32.mrf.mxu1 }
 0x113   : > { %706 = vst.msk [vmem:[#allocation2 + $0x18] sm:$0xff] %vm702_vm15, %v701_v52  ;;  %v582_v53 = vpop.xlane.xlu1 %581  ;;  %866 = vmax.xlane.f32.xlu1 %v865_v2  ;;  %2014 = vmatprep.subr.mxu0 %v2309_v28 }
 0x114   : > { %593 = vst.msk [vmem:[#allocation2] sm:$0xff] %vm592_vm10, %v582_v53  ;;  %2015 = vmatpush3.msra.mxu0 %v546_v30  ;;  %vm850_vm10 = vcmask 113768  }
 0x115   : > { %2016 = vmatprep.subr.mxu0 %v2309_v28 }
 0x116   : > { %797 = vmax.xlane.f32.xlu0 %v796_v54  ;;  %v629_v59 = vpop.xlane.xlu0 %628  ;;  %2017 = vmatpush3.msra.mxu0 %v545_v32 }
 0x117   : > { %638 = vst.msk [vmem:[#allocation2 + $0x8] sm:$0xff] %vm636_vm12, %v629_v59  ;;  %v676_v60 = vpop.xlane.xlu1 %675  ;;  %842 = vmax.xlane.f32.xlu1 %v841_v57  ;;  %2032 = vmatprep.subr.mxu0 %v2309_v28 }
 0x118   : > { %683 = vst.msk [vmem:[#allocation2 + $0x10] sm:$0xff] %vm680_vm14, %v676_v60  ;;  %2019 = vmatmul.mubr.msk.f32.vlgmr.msra.gmra.mxu0 %vm1069_vm5, %v2745_v42 }
 0x119   : > { %2033 = vmatpush3.msra.mxu0 %v552_v41  ;;  %2040 = vmatprep.mubr.msk.f32.mxu0 %vm2310_vm4, %v2309_v28 }
 0x11a   : > { %887 = vmax.xlane.f32.xlu0 %v886_v63  ;;  %v723_v12 = vpop.xlane.xlu0 %722  ;;  %2034 = vmatprep.subr.mxu0 %v2309_v28 }
 0x11b   : > { %728 = vst.msk [vmem:[#allocation2 + $0x18] sm:$0xff] %vm724_vm1, %v723_v12  ;;  %v604_v13 = vpop.xlane.xlu1 %603  ;;  %818 = vmax.xlane.f32.xlu1 %v817_v9  ;;  %2035 = vmatpush3.msra.mxu0 %v551_v40 }
 0x11c   : > { %615 = vst.msk [vmem:[#allocation2] sm:$0xff] %vm614_vm11, %v604_v13  ;;  %2036 = vmatprep.subr.mxu0 %v2309_v28  ;;  %vm871_vm11 = vcmask 121968  }
 0x11d   : > { %2037 = vmatpush3.msra.mxu0 %v550_v46 }
 0x11e   : > { %863 = vmax.xlane.f32.xlu0 %v862_v1  ;;  %v651_v19 = vpop.xlane.xlu0 %650  ;;  %2038 = vmatprep.subr.mxu0 %v2309_v28 }
 0x11f   : > { %660 = vst.msk [vmem:[#allocation2 + $0x8] sm:$0xff] %vm658_vm13, %v651_v19  ;;  %v698_v20 = vpop.xlane.xlu1 %697  ;;  %839 = vmax.xlane.f32.xlu1 %v838_v3  ;;  %2039 = vmatpush3.msra.mxu0 %v549_v47  ;;  %v2312_v3 = vmov 0   ;;  %v1023_v19 = vld [vmem:[%s3044_s4 + $0x10] sm:$0xff] }
 0x120   : > { %705 = vst.msk [vmem:[#allocation2 + $0x10] sm:$0xff] %vm702_vm15, %v698_v20  ;;  %2041 = vmatmul.mubr.msk.f32.vlgmr.msra.gmra.mxu0 %vm1069_vm5, %v2745_v42  ;;  %2139 = vset.pattern.permute.xlu0 %v2312_v3  ;;  %v1024_v20 = vld [vmem:[%s3044_s4 + $0x18] sm:$0xff] }
 0x121   : > { %2140 = vset.pattern.permute.xlu1 %v2312_v3 }
 0x122   : > { %884 = vmax.xlane.f32.xlu0 %v883_v21  ;;  %v744_v27 = vpop.xlane.xlu0 %743 }
 0x123   : > { %749 = vst.msk [vmem:[#allocation2 + $0x18] sm:$0xff] %vm745_vm2, %v744_v27  ;;  %v626_v5 = vpop.xlane.xlu1 %625  ;;  %860 = vmax.xlane.f32.xlu1 %v859_v22 }
 0x124   : > { %637 = vst.msk [vmem:[#allocation2] sm:$0xff] %vm636_vm12, %v626_v5  ;;  %vm892_vm12 = vcmask 130168  }
 0x126   : > { %881 = vmax.xlane.f32.xlu0 %v880_v7  ;;  %v673_v33 = vpop.xlane.xlu0 %672 }
 0x127   : > { %682 = vst.msk [vmem:[#allocation2 + $0x8] sm:$0xff] %vm680_vm14, %v673_v33  ;;  %v720_v35 = vpop.xlane.xlu1 %719 }
 0x128   : > { %727 = vst.msk [vmem:[#allocation2 + $0x10] sm:$0xff] %vm724_vm1, %v720_v35 }
 0x12a   : > { %v765_v36 = vpop.xlane.xlu0 %764 }
 0x12b   : > { %770 = vst.msk [vmem:[#allocation2 + $0x18] sm:$0xff] %vm766_vm3, %v765_v36  ;;  %v648_v38 = vpop.xlane.xlu1 %647 }
 0x12c   : > { %659 = vst.msk [vmem:[#allocation2] sm:$0xff] %vm658_vm13, %v648_v38  ;;  %vm985_vm13 = vcmp.lt.s32.totalorder %v2595_v50, 64 }
 0x12e   : > { %v695_v43 = vpop.xlane.xlu0 %694 }
 0x12f   : > { %704 = vst.msk [vmem:[#allocation2 + $0x8] sm:$0xff] %vm702_vm15, %v695_v43  ;;  %v741_v45 = vpop.xlane.xlu1 %740 }
 0x130   : > { %748 = vst.msk [vmem:[#allocation2 + $0x10] sm:$0xff] %vm745_vm2, %v741_v45 }
 0x132   : > { %v786_v48 = vpop.xlane.xlu0 %785 }
 0x133   : > { %791 = vst.msk [vmem:[#allocation2 + $0x18] sm:$0xff] %vm787_vm6, %v786_v48  ;;  %v670_v49 = vpop.xlane.xlu1 %669 }
 0x134   : > { %681 = vst.msk [vmem:[#allocation2] sm:$0xff] %vm680_vm14, %v670_v49  ;;  %vm1359_vm14 = vcmask 64512  }
 0x136   : > { %v943_v51 = vpop.permute.xlu0 %942 }
 0x137   : > { %v951_v2 = vpop.permute.xlu1 %950 }
 0x138   : > { %v956_v52 = vsel %vm952_vm7, %v943_v51, %v951_v2  ;;  %v960_v53 = vsel %vm952_vm7, %v951_v2, %v943_v51 }
 0x139   : > { %v2768_v54 = vmax.f32 %v2609_v61, %v960_v53  ;;  %v2771_v55 = vmax.f32 %v2601_v56, %v956_v52 }
 0x13a   : > { %v941_v57 = vpop.permute.xlu0 %940 }
 0x13b   : > { %v949_v58 = vpop.permute.xlu1 %948  ;;  %975 = vrot.lane.b32.xlu1 %v2768_v54, %s2311_s21 }
 0x13c   : > { %v959_v59 = vsel %vm952_vm7, %v949_v58, %v941_v57  ;;  %983 = vrot.lane.b32.xlu0 %v2771_v55, %s2311_s21  ;;  %v955_v61 = vsel %vm952_vm7, %v941_v57, %v949_v58 }
 0x13d   : > { %v2778_v60 = vmax.f32 %v2621_v11, %v959_v59  ;;  %v2786_v9 = vmax.f32 %v2612_v62, %v955_v61 }
 0x13e   : > { %v939_v63 = vpop.permute.xlu0 %938 }
 0x13f   : > { %v947_v8 = vpop.permute.xlu1 %946  ;;  %973 = vrot.lane.b32.xlu1 %v2778_v60, %s2311_s21 }
 0x140   : > { %v958_v56 = vsel %vm952_vm7, %v947_v8, %v939_v63  ;;  %v954_v11 = vsel %vm952_vm7, %v939_v63, %v947_v8 }
 0x141   : > { %v2789_v10 = vmax.f32 %v2633_v14, %v958_v56  ;;  %v2798_v17 = vmax.f32 %v2624_v0, %v954_v11 }
 0x142   : > { %v937_v12 = vpop.permute.xlu0 %936 }
 0x143   : > { %v945_v13 = vpop.permute.xlu1 %944  ;;  %981 = vrot.lane.b32.xlu1 %v2786_v9, %s2311_s21  ;;  %971 = vrot.lane.b32.xlu0 %v2789_v10, %s2311_s21 }
 0x144   : > { %v957_v1 = vsel %vm952_vm7, %v945_v13, %v937_v12  ;;  %v953_v14 = vsel %vm952_vm7, %v937_v12, %v945_v13 }
 0x145   : > { %v2801_v62 = vmax.f32 %v2643_v16, %v957_v1  ;;  %v2811_v0 = vmax.f32 %v2636_v15, %v953_v14  ;;  %v1022_v16 = vld [vmem:[%s3044_s4 + $0x8] sm:$0xff] }
 0x147   : > { %979 = vrot.lane.b32.xlu1 %v2798_v17, %s2311_s21  ;;  %969 = vrot.lane.b32.xlu0 %v2801_v62, %s2311_s21 }
 0x14b   : > { %977 = vrot.lane.b32.xlu1 %v2811_v0, %s2311_s21  ;;  %1018 = vperm.xlu0 %2139, %v1015_v18   ;;  %s2999_s21 = scalar_lea.sflag [#allocation5], %s351_s16 }
 0x14f   : > { %1032 = vperm.xlu0 %2139, %v1022_v16  }
 0x153   : > { %1037 = vperm.xlu0 %2139, %v1023_v19  }
 0x157   : > { %1042 = vperm.xlu0 %2139, %v1024_v20  }
 0x173   : > { %v717_v15 = vpop.xlane.xlu0 %716 }
 0x174   : > { %726 = vst.msk [vmem:[#allocation2 + $0x8] sm:$0xff] %vm724_vm1, %v717_v15  ;;  %v762_v21 = vpop.xlane.xlu1 %761 }
 0x175   : > { %769 = vst.msk [vmem:[#allocation2 + $0x10] sm:$0xff] %vm766_vm3, %v762_v21 }
 0x177   : > { %v807_v6 = vpop.xlane.xlu0 %806 }
 0x178   : > { %812 = vst.msk [vmem:[#allocation2 + $0x18] sm:$0xff] %vm808_vm8, %v807_v6  ;;  %v692_v22 = vpop.xlane.xlu1 %691 }
 0x179   : > { %703 = vst.msk [vmem:[#allocation2] sm:$0xff] %vm702_vm15, %v692_v22 }
 0x17b   : > { %v738_v23 = vpop.xlane.xlu0 %737 }
 0x17c   : > { %747 = vst.msk [vmem:[#allocation2 + $0x8] sm:$0xff] %vm745_vm2, %v738_v23  ;;  %v783_v24 = vpop.xlane.xlu1 %782 }
 0x17d   : > { %790 = vst.msk [vmem:[#allocation2 + $0x10] sm:$0xff] %vm787_vm6, %v783_v24 }
 0x17f   : > { %v828_v25 = vpop.xlane.xlu0 %827 }
 0x180   : > { %833 = vst.msk [vmem:[#allocation2 + $0x18] sm:$0xff] %vm829_vm9, %v828_v25  ;;  %v714_v26 = vpop.xlane.xlu1 %713  ;;  %v1007_v25 = vld [vmem:[%s3043_s3] sm:$0xff] }
 0x181   : > { %725 = vst.msk [vmem:[#allocation2] sm:$0xff] %vm724_vm1, %v714_v26  ;;  %2056 = vmatprep.mubr.msk.f32.mxu0 %vm1359_vm14, %v1007_v25  ;;  %v1045_v26 = vld [vmem:[%s3046_s6] sm:$0xff] }
 0x183   : > { %v759_v27 = vpop.xlane.xlu0 %758 }
 0x184   : > { %768 = vst.msk [vmem:[#allocation2 + $0x8] sm:$0xff] %vm766_vm3, %v759_v27  ;;  %v804_v29 = vpop.xlane.xlu1 %803  ;;  %v1046_v27 = vld [vmem:[%s3046_s6 + $0x8] sm:$0xff] }
 0x185   : > { %811 = vst.msk [vmem:[#allocation2 + $0x10] sm:$0xff] %vm808_vm8, %v804_v29  ;;  %v1047_v29 = vld [vmem:[%s3046_s6 + $0x10] sm:$0xff] }
 0x187   : > { %v849_v5 = vpop.xlane.xlu0 %848 }
 0x188   : > { %854 = vst.msk [vmem:[#allocation2 + $0x18] sm:$0xff] %vm850_vm10, %v849_v5  ;;  %v735_v7 = vpop.xlane.xlu1 %734  ;;  %v1048_v5 = vld [vmem:[%s3046_s6 + $0x18] sm:$0xff] }
 0x189   : > { %746 = vst.msk [vmem:[#allocation2] sm:$0xff] %vm745_vm2, %v735_v7 }
 0x18b   : > { %v780_v30 = vpop.xlane.xlu0 %779 }
 0x18c   : > { %789 = vst.msk [vmem:[#allocation2 + $0x8] sm:$0xff] %vm787_vm6, %v780_v30  ;;  %v825_v31 = vpop.xlane.xlu1 %824 }
 0x18d   : > { %832 = vst.msk [vmem:[#allocation2 + $0x10] sm:$0xff] %vm829_vm9, %v825_v31 }
 0x18f   : > { %v870_v32 = vpop.xlane.xlu0 %869 }
 0x190   : > { %875 = vst.msk [vmem:[#allocation2 + $0x18] sm:$0xff] %vm871_vm11, %v870_v32  ;;  %v756_v33 = vpop.xlane.xlu1 %755 }
 0x191   : > { %767 = vst.msk [vmem:[#allocation2] sm:$0xff] %vm766_vm3, %v756_v33 }
 0x193   : > { %v801_v34 = vpop.xlane.xlu0 %800 }
 0x194   : > { %810 = vst.msk [vmem:[#allocation2 + $0x8] sm:$0xff] %vm808_vm8, %v801_v34  ;;  %v846_v35 = vpop.xlane.xlu1 %845 }
 0x195   : > { %853 = vst.msk [vmem:[#allocation2 + $0x10] sm:$0xff] %vm850_vm10, %v846_v35 }
 0x197   : > { %v891_v4 = vpop.xlane.xlu0 %890 }
 0x198   : > { %896 = vst.msk [vmem:[#allocation2 + $0x18] sm:$0xff] %vm892_vm12, %v891_v4  ;;  %v777_v36 = vpop.xlane.xlu1 %776 }
 0x199   : > { %788 = vst.msk [vmem:[#allocation2] sm:$0xff] %vm787_vm6, %v777_v36  ;;  %v1008_v36 = vld [vmem:[%s3043_s3 + $0x8] sm:$0xff] }
 0x19b   : > { %v822_v37 = vpop.xlane.xlu0 %821 }
 0x19c   : > { %831 = vst.msk [vmem:[#allocation2 + $0x8] sm:$0xff] %vm829_vm9, %v822_v37  ;;  %v867_v38 = vpop.xlane.xlu1 %866  ;;  %v1009_v37 = vld [vmem:[%s3043_s3 + $0x10] sm:$0xff] }
 0x19d   : > { %874 = vst.msk [vmem:[#allocation2 + $0x10] sm:$0xff] %vm871_vm11, %v867_v38  ;;  %v2173_v38 = vld [vmem:[%s3047_s7 + $0x18] sm:$0xff] }
 0x19f   : > { %v798_v39 = vpop.xlane.xlu0 %797  ;;  %v900_v40 = vld [vmem:[#allocation2 + $0x18] sm:$0xff] }
 0x1a0   : > { %809 = vst.msk [vmem:[#allocation2] sm:$0xff] %vm808_vm8, %v798_v39  ;;  %v843_v41 = vpop.xlane.xlu1 %842  ;;  %2022 = vmatpush3.msra.mxu1 %v900_v40  ;;  %v1010_v39 = vld [vmem:[%s3043_s3 + $0x18] sm:$0xff]  ;;  %v2174_v40 = vld [vmem:[%s3047_s7 + $0x10] sm:$0xff] }
 0x1a1   : > { %852 = vst.msk [vmem:[#allocation2 + $0x8] sm:$0xff] %vm850_vm10, %v843_v41  ;;  %2023 = vmatprep.subr.mxu1 %v2309_v28  ;;  %v2175_v41 = vld [vmem:[%s3047_s7 + $0x8] sm:$0xff] }
 0x1a3   : > { %v888_v43 = vpop.xlane.xlu0 %887 }
 0x1a4   : > { %895 = vst.msk [vmem:[#allocation2 + $0x10] sm:$0xff] %vm892_vm12, %v888_v43  ;;  %v819_v44 = vpop.xlane.xlu1 %818  ;;  %v2176_v43 = vld [vmem:[%s3047_s7] sm:$0xff] }
 0x1a5   : > { %830 = vst.msk [vmem:[#allocation2] sm:$0xff] %vm829_vm9, %v819_v44 }
 0x1a7   : > { %v864_v45 = vpop.xlane.xlu0 %863 }
 0x1a8   : > { %873 = vst.msk [vmem:[#allocation2 + $0x8] sm:$0xff] %vm871_vm11, %v864_v45  ;;  %v840_v46 = vpop.xlane.xlu1 %839 }
 0x1a9   : > { %851 = vst.msk [vmem:[#allocation2] sm:$0xff] %vm850_vm10, %v840_v46 }
 0x1ab   : > { %v885_v47 = vpop.xlane.xlu0 %884  ;;  %v899_v48 = vld [vmem:[#allocation2 + $0x10] sm:$0xff] }
 0x1ac   : > { %894 = vst.msk [vmem:[#allocation2 + $0x8] sm:$0xff] %vm892_vm12, %v885_v47  ;;  %v861_v49 = vpop.xlane.xlu1 %860  ;;  %2024 = vmatpush3.msra.mxu1 %v899_v48 }
 0x1ad   : > { %872 = vst.msk [vmem:[#allocation2] sm:$0xff] %vm871_vm11, %v861_v49  ;;  %2025 = vmatprep.subr.mxu1 %v2309_v28 }
 0x1af   : > { %v882_v51 = vpop.xlane.xlu0 %881 }
 0x1b0   : > { %893 = vst.msk [vmem:[#allocation2] sm:$0xff] %vm892_vm12, %v882_v51  ;;  %v976_v2 = vpop.permute.xlu1 %975 }
 0x1b3   : > { %v984_v52 = vpop.permute.xlu0 %983  ;;  %v898_v53 = vld [vmem:[#allocation2 + $0x8] sm:$0xff] }
 0x1b4   : > { %v989_v57 = vsel %vm985_vm13, %v976_v2, %v984_v52  ;;  %v993_v58 = vsel %vm985_vm13, %v984_v52, %v976_v2  ;;  %v974_v59 = vpop.permute.xlu1 %973  ;;  %2026 = vmatpush3.msra.mxu1 %v898_v53  ;;  %v1012_v2 = vld [vmem:[%s3045_s5 + $0x8] sm:$0xff]  ;;  %v1013_v52 = vld [vmem:[%s3045_s5 + $0x10] sm:$0xff]  ;;  %v2177_v53 = vld [vmem:[#allocation6 + $0x18] sm:$0xff] }
 0x1b5   : > { %v1000_v61 = vmax.f32 %v2768_v54, %v993_v58  ;;  %v1001_v63 = vmax.f32 %v2771_v55, %v989_v57  ;;  %2027 = vmatprep.subr.mxu1 %v2309_v28  ;;  %v1014_v57 = vld [vmem:[%s3045_s5 + $0x18] sm:$0xff] }
 0x1b6   : > { %v2178_v58 = vld [vmem:[#allocation6 + $0x10] sm:$0xff] }
 0x1b7   : > { %v1005_v8 = vmax.f32 %v1000_v61, %v1001_v63  ;;  %v897_v56 = vld [vmem:[#allocation2] sm:$0xff]  ;;  %v972_v54 = vpop.permute.xlu0 %971  ;;  %v2180_v61 = vld [vmem:[#allocation6] sm:$0xff] }
 0x1b8   : > { %v982_v11 = vpop.permute.xlu1 %981  ;;  %2028 = vmatpush3.msra.mxu1 %v897_v56 }
 0x1b9   : > { %v988_v12 = vsel %vm985_vm13, %v974_v59, %v982_v11  ;;  %v992_v13 = vsel %vm985_vm13, %v982_v11, %v974_v59  ;;  %2030 = vmatmul.mubr.msk.f32.vlgmr.msra.gmra.mxu1 %vm1069_vm5, %v2745_v42  ;;  %2043 = vmatprep.subr.mxu1 %v2309_v28  ;;  %v2179_v59 = vld [vmem:[#allocation6 + $0x8] sm:$0xff] }
 0x1ba   : > { %v998_v55 = vmax.f32 %v2778_v60, %v992_v13  ;;  %v999_v1 = vmax.f32 %v2786_v9, %v988_v12  ;;  %2044 = vmatpush3.msra.mxu1 %v1005_v8  ;;  %2051 = vmatprep.mubr.msk.f32.mxu1 %vm2310_vm4, %v2309_v28 }
 0x1bb   : > { %2045 = vmatprep.subr.mxu1 %v2309_v28  ;;  %v970_v9 = vpop.permute.xlu0 %969 }
 0x1bc   : > { %v1004_v14 = vmax.f32 %v998_v55, %v999_v1  ;;  %v980_v3 = vpop.permute.xlu1 %979 }
 0x1bd   : > { %v987_v18 = vsel %vm985_vm13, %v972_v54, %v980_v3  ;;  %v991_v16 = vsel %vm985_vm13, %v980_v3, %v972_v54 }
 0x1be   : > { %v996_v19 = vmax.f32 %v2789_v10, %v991_v16  ;;  %v997_v60 = vmax.f32 %v2798_v17, %v987_v18  ;;  %2046 = vmatpush3.msra.mxu1 %v1004_v14 }
 0x1bf   : > { %2047 = vmatprep.subr.mxu1 %v2309_v28 }
 0x1c0   : > { %v1003_v20 = vmax.f32 %v996_v19, %v997_v60  ;;  %v978_v15 = vpop.permute.xlu1 %977 }
 0x1c1   : > { %v986_v21 = vsel %vm985_vm13, %v970_v9, %v978_v15  ;;  %v990_v6 = vsel %vm985_vm13, %v978_v15, %v970_v9 }
 0x1c2   : > { %v994_v22 = vmax.f32 %v2801_v62, %v990_v6  ;;  %v995_v23 = vmax.f32 %v2811_v0, %v986_v21  ;;  %2048 = vmatpush3.msra.mxu1 %v1003_v20  ;;  %v1011_v0 = vld [vmem:[%s3045_s5] sm:$0xff] }
 0x1c3   : > { %2049 = vmatprep.subr.mxu1 %v2309_v28 }
 0x1c4   : > { %v1002_v10 = vmax.f32 %v994_v22, %v995_v23 }
 0x1c6   : > { %2050 = vmatpush3.msra.mxu1 %v1002_v10  ;;  %v1019_v7 = vpop.permute.xlu0 %1018 }
 0x1c7   : > { %2052 = vmatmul.mubr.msk.f32.vlgmr.msra.gmra.mxu1 %vm1069_vm5, %v2745_v42  ;;  %v1021_v42 = vld [vmem:[%s3044_s4] sm:$0xff] }
 0x1c8   : > { %2064 = vmatprep.mubr.msk.f32.mxu1 %vm1359_vm14, %v1011_v0  ;;  %1027 = vperm.xlu1 %2140, %v1021_v42  }
 0x1ca   : > { %v1033_v63 = vpop.permute.xlu0 %1032 }
 0x1cc   : > { %1051 = vperm.xlu1 %2140, %v1045_v26  }
 0x1ce   : > { %v1038_v56 = vpop.permute.xlu0 %1037 }
 0x1d0   : > { %1056 = vperm.xlu1 %2140, %v1046_v27  }
 0x1d2   : > { %v1043_v18 = vpop.permute.xlu0 %1042 }
 0x1d4   : > { %1061 = vperm.xlu1 %2140, %v1047_v29  }
 0x1d8   : > { %v1139_v17 = vpop.f32.mrf.mxu0  ;;  %1066 = vperm.xlu1 %2140, %v1048_v5  }
 0x1d9   : > { %v1140_v30 = vadd.f32 %v1139_v17, %v1019_v7 }
 0x1da   : > { %v2020_v24 = vpop.f32.mrf.mxu0 }
 0x1db   : > { %v1143_v32 = vmax.f32 %v1140_v30, 0.0 }
 0x1e0   : > { %v1282_v50 = vpop.f32.mrf.mxu0 }
 0x1e1   : > { %v1283_v44 = vadd.f32 %v1282_v50, %v1019_v7 }
 0x1e2   : > { %v2042_v62 = vpop.f32.mrf.mxu0 }
 0x1e3   : > { %v1286_v48 = vmax.f32 %v1283_v44, 0.0 }
 0x243   : > { %v1028_v8 = vpop.permute.xlu1 %1027 }
 0x247   : > { %v1052_v1 = vpop.permute.xlu1 %1051 }
 0x24b   : > { %v1057_v20 = vpop.permute.xlu1 %1056 }
 0x24f   : > { %v1062_v6 = vpop.permute.xlu1 %1061 }
 0x253   : > { %v1067_v26 = vpop.permute.xlu1 %1066 }
 0x279   : > { %v1210_v31 = vpop.f32.mrf.mxu1 }
 0x27a   : > { %v1211_v33 = vadd.f32 %v1210_v31, %v1019_v7 }
 0x27b   : > { %v2031_v34 = vpop.f32.mrf.mxu1 }
 0x27c   : > { %v1214_v35 = vmax.f32 %v1211_v33, 0.0 }
 0x27e   : > { %v1215_v4 = vadd.f32 %v1214_v35, %v1143_v32 }
 0x280   : > { %2054 = vmatprep.subr.mxu0 %v1215_v4 }
 0x281   : > { %2055 = vmatpush3.msra.mxu0 %v1215_v4 }
 0x282   : > { %2057 = vmatmul.mubr.msk.f32.vlgmr.msra.gmra.mxu0 %vm1359_vm14, %v1008_v36  ;;  %1642 = vmatprep.subr.mxu0 %v2173_v38 }
 0x283   : > { %2059 = vmatprep.mubr.msk.f32.mxu0 %vm1359_vm14, %v1009_v37  ;;  %1643 = vmatpush1.msra.mxu0 %v2174_v40 }
 0x284   : > { %1644 = vmatprep.subr.mxu0 %v2175_v41 }
 0x285   : > { %1645 = vmatpush1.msra.mxu0 %v2176_v43 }
 0x286   : > { %2060 = vmatmul.mubr.msk.f32.gmra.mxu0 %vm1359_vm14, %v1010_v39 }
 0x287   : > { %v1353_v45 = vpop.f32.mrf.mxu1  ;;  %1678 = vmatprep.mubr.f32.mxu0 %v2309_v28 }
 0x288   : > { %v1354_v46 = vadd.f32 %v1353_v45, %v1019_v7 }
 0x289   : > { %v2053_v47 = vpop.f32.mrf.mxu1 }
 0x28a   : > { %v1357_v49 = vmax.f32 %v1354_v46, 0.0 }
 0x28c   : > { %v1358_v51 = vadd.f32 %v1357_v49, %v1286_v48 }
 0x28e   : > { %2062 = vmatprep.subr.mxu1 %v1358_v51 }
 0x28f   : > { %2063 = vmatpush3.msra.mxu1 %v1358_v51 }
 0x290   : > { %2065 = vmatmul.mubr.msk.f32.vlgmr.msra.gmra.mxu1 %vm1359_vm14, %v1012_v2  ;;  %1743 = vmatprep.subr.mxu1 %v2177_v53 }
 0x291   : > { %2067 = vmatprep.mubr.msk.f32.mxu1 %vm1359_vm14, %v1013_v52  ;;  %1744 = vmatpush1.msra.mxu1 %v2178_v58  ;;  %v1804_v58 = vld [vmem:[%s2459_s27] sm:$0xff] }
 0x292   : > { %1745 = vmatprep.subr.mxu1 %v2179_v59  ;;  %v1805_v59 = vld [vmem:[%s2459_s27 + $0x8] sm:$0xff] }
 0x293   : > { %1746 = vmatpush1.msra.mxu1 %v2180_v61 }
 0x294   : > { %2068 = vmatmul.mubr.msk.f32.gmra.mxu1 %vm1359_vm14, %v1014_v57 }
 0x295   : > { %1779 = vmatprep.mubr.f32.mxu1 %v2309_v28 }
 0x342   : > { %v2058_v11 = vpop.f32.mrf.mxu0 }
 0x343   : > { %v1444_v12 = vadd.f32 %v2058_v11, %v1033_v63 }
 0x344   : > { %v1438_v13 = vpop.f32.mrf.mxu0 }
 0x345   : > { %v1954_v54 = vmul.f32 -1.442695, %v1444_v12  ;;  %v1439_v55 = vadd.f32 %v1438_v13, %v1028_v8  ;;  %v1806_v8 = vld [vmem:[%s2459_s27 + $0x10] sm:$0xff]  ;;  %v1807_v12 = vld [vmem:[%s2459_s27 + $0x18] sm:$0xff] }
 0x346   : > { %v2061_v14 = vpop.f32.mrf.mxu0 }
 0x347   : > { %v1953_v3 = vmul.f32 -1.442695, %v1439_v55  ;;  %2141 = vpow2.f32 %v1954_v54  ;;  %v1454_v19 = vadd.f32 %v2061_v14, %v1043_v18  ;;  %v1808_v14 = vld [vmem:[%s2459_s27 + $0x20] sm:$0xff] }
 0x348   : > { %v1448_v16 = vpop.f32.mrf.mxu0 }
 0x349   : > { %2143 = vpow2.f32 %v1953_v3  ;;  %v1449_v60 = vadd.f32 %v1448_v16, %v1038_v56  ;;  %v1956_v15 = vmul.f32 -1.442695, %v1454_v19  ;;  %v1809_v19 = vld [vmem:[%s2459_s27 + $0x28] sm:$0xff] }
 0x34b   : > { %v1955_v9 = vmul.f32 -1.442695, %v1449_v60 }
 0x34d   : > { %2145 = vpow2.f32 %v1955_v9 }
 0x34e   : > { %2147 = vpow2.f32 %v1956_v15 }
 0x350   : > { %v2066_v21 = vpop.f32.mrf.mxu1 }
 0x351   : > { %v1565_v22 = vadd.f32 %v2066_v21, %v1057_v20  ;;  %v1810_v21 = vld [vmem:[%s2459_s27 + $0x30] sm:$0xff] }
 0x352   : > { %v1559_v23 = vpop.f32.mrf.mxu1 }
 0x353   : > { %v1962_v10 = vmul.f32 -1.442695, %v1565_v22  ;;  %v1560_v17 = vadd.f32 %v1559_v23, %v1052_v1 }
 0x354   : > { %v2069_v24 = vpop.f32.mrf.mxu1  ;;  %v2142_v25 = vpop.eup %2141 }
 0x355   : > { %v1961_v50 = vmul.f32 -1.442695, %v1560_v17  ;;  %2149 = vpow2.f32 %v1962_v10  ;;  %v1575_v29 = vadd.f32 %v2069_v24, %v1067_v26  ;;  %v1470_v5 = vadd.f32 1.0, %v2142_v25  ;;  %v1811_v17 = vld [vmem:[%s2459_s27 + $0x38] sm:$0xff] }
 0x356   : > { %v2144_v62 = vpop.eup %2143  ;;  %v1569_v0 = vpop.f32.mrf.mxu1 }
 0x357   : > { %v1469_v42 = vadd.f32 1.0, %v2144_v62  ;;  %v1570_v27 = vadd.f32 %v1569_v0, %v1062_v6  ;;  %2151 = vpow2.f32 %v1961_v50  ;;  %v1964_v31 = vmul.f32 -1.442695, %v1575_v29 }
 0x359   : > { %2153 = vrcp.f32 %v1469_v42  ;;  %v1963_v7 = vmul.f32 -1.442695, %v1570_v27 }
 0x35a   : > { %v2146_v30 = vpop.eup %2145 }
 0x35b   : > { %2155 = vpow2.f32 %v1963_v7  ;;  %v1471_v32 = vadd.f32 1.0, %v2146_v30  ;;  %v2148_v33 = vpop.eup %2147 }
 0x35c   : > { %2157 = vrcp.f32 %v1470_v5  ;;  %v1472_v34 = vadd.f32 1.0, %v2148_v33 }
 0x35d   : > { %2159 = vpow2.f32 %v1964_v31 }
 0x35e   : > { %2161 = vrcp.f32 %v1471_v32 }
 0x35f   : > { %2163 = vrcp.f32 %v1472_v34 }
 0x362   : > { %v2150_v35 = vpop.eup %2149 }
 0x363   : > { %v1591_v38 = vadd.f32 1.0, %v2150_v35 }
 0x364   : > { %v2152_v4 = vpop.eup %2151 }
 0x365   : > { %v1590_v37 = vadd.f32 1.0, %v2152_v4 }
 0x366   : > { %v2154_v36 = vpop.eup %2153 }
 0x367   : > { %1965 = vmatmul.mubr.msk.f32.vlgmr.msra.gmra.mxu0 %vm557_vm0, %v2154_v36  ;;  %2165 = vrcp.f32 %v1590_v37 }
 0x368   : > { %1684 = vmatprep.mubr.f32.mxu0 %v2309_v28  ;;  %v2156_v39 = vpop.eup %2155  ;;  %2167 = vrcp.f32 %v1591_v38 }
 0x369   : > { %v2158_v40 = vpop.eup %2157  ;;  %v1592_v41 = vadd.f32 1.0, %v2156_v39 }
 0x36a   : > { %v2160_v43 = vpop.eup %2159 }
 0x36b   : > { %1966 = vmatmul.mubr.msk.f32.gmra.mxu0 %vm557_vm0, %v2158_v40  ;;  %v2162_v44 = vpop.eup %2161  ;;  %v1593_v45 = vadd.f32 1.0, %v2160_v43  ;;  %2169 = vrcp.f32 %v1592_v41 }
 0x36c   : > { %1690 = vmatprep.mubr.f32.mxu0 %v2309_v28  ;;  %v2164_v46 = vpop.eup %2163 }
 0x36d   : > { %2171 = vrcp.f32 %v1593_v45 }
 0x36f   : > { %1967 = vmatmul.mubr.msk.f32.gmra.mxu0 %vm557_vm0, %v2162_v44 }
 0x370   : > { %1696 = vmatprep.mubr.f32.mxu0 %v2309_v28 }
 0x373   : > { %1968 = vmatmul.mubr.msk.f32.gmra.mxu0 %vm557_vm0, %v2164_v46 }
 0x374   : > { %v2166_v47 = vpop.eup %2165 }
 0x375   : > { %1969 = vmatmul.mubr.msk.f32.vlgmr.msra.gmra.mxu1 %vm557_vm0, %v2166_v47  ;;  %v2168_v48 = vpop.eup %2167 }
 0x376   : > { %1785 = vmatprep.mubr.f32.mxu1 %v2309_v28 }
 0x378   : > { %v2170_v49 = vpop.eup %2169 }
 0x379   : > { %1970 = vmatmul.mubr.msk.f32.gmra.mxu1 %vm557_vm0, %v2168_v48 }
 0x37a   : > { %1791 = vmatprep.mubr.f32.mxu1 %v2309_v28  ;;  %v2172_v51 = vpop.eup %2171 }
 0x37d   : > { %1971 = vmatmul.mubr.msk.f32.gmra.mxu1 %vm557_vm0, %v2170_v49 }
 0x37e   : > { %1797 = vmatprep.mubr.f32.mxu1 %v2309_v28 }
 0x381   : > { %1972 = vmatmul.mubr.msk.f32.gmra.mxu1 %vm557_vm0, %v2172_v51 }
 0x427   : > { %v1680_v2 = vpop.f32.mrf.mxu0 }
 0x428   : > { %v1812_v63 = vmul.f32 %v1804_v58, %v1680_v2 }
 0x429   : > { %v1682_v52 = vpop.f32.mrf.mxu0 }
 0x42a   : > { %v1813_v28 = vmul.f32 %v1805_v59, %v1682_v52 }
 0x42b   : > { %v1686_v53 = vpop.f32.mrf.mxu0 }
 0x42c   : > { %v1814_v55 = vmul.f32 %v1806_v8, %v1686_v53 }
 0x42d   : > { %v1688_v57 = vpop.f32.mrf.mxu0 }
 0x42e   : > { %v1815_v18 = vmul.f32 %v1807_v12, %v1688_v57 }
 0x42f   : > { %v1692_v61 = vpop.f32.mrf.mxu0 }
 0x430   : > { %v1816_v20 = vmul.f32 %v1808_v14, %v1692_v61 }
 0x431   : > { %v1694_v13 = vpop.f32.mrf.mxu0 }
 0x432   : > { %v1817_v22 = vmul.f32 %v1809_v19, %v1694_v13 }
 0x433   : > { %v1698_v60 = vpop.f32.mrf.mxu0 }
 0x434   : > { %v1818_v25 = vmul.f32 %v1810_v21, %v1698_v60 }
 0x435   : > { %v1781_v56 = vpop.f32.mrf.mxu1  ;;  %v1700_v10 = vpop.f32.mrf.mxu0 }
 0x436   : > { %v1820_v11 = vmul.f32 %v1812_v63, %v1781_v56  ;;  %v1819_v0 = vmul.f32 %v1811_v17, %v1700_v10 }
 0x437   : > { %v1783_v54 = vpop.f32.mrf.mxu1 }
 0x438   : > { %1828 = vst [vmem:[%s2974_s22] sm:$0xff] %v1820_v11  ;;  %v1821_v1 = vmul.f32 %v1813_v28, %v1783_v54 }
 0x439   : > { %v1787_v3 = vpop.f32.mrf.mxu1 }
 0x43a   : > { %1829 = vst [vmem:[%s2974_s22 + $0x8] sm:$0xff] %v1821_v1  ;;  %v1822_v16 = vmul.f32 %v1814_v55, %v1787_v3 }
 0x43b   : > { %v1789_v9 = vpop.f32.mrf.mxu1 }
 0x43c   : > { %1830 = vst [vmem:[%s2974_s22 + $0x10] sm:$0xff] %v1822_v16  ;;  %v1823_v15 = vmul.f32 %v1815_v18, %v1789_v9 }
 0x43d   : > { %v1793_v6 = vpop.f32.mrf.mxu1 }
 0x43e   : > { %1831 = vst [vmem:[%s2974_s22 + $0x18] sm:$0xff] %v1823_v15  ;;  %v1824_v23 = vmul.f32 %v1816_v20, %v1793_v6 }
 0x43f   : > { %v1795_v24 = vpop.f32.mrf.mxu1 }
 0x440   : > { %1832 = vst [vmem:[%s2974_s22 + $0x20] sm:$0xff] %v1824_v23  ;;  %v1825_v50 = vmul.f32 %v1817_v22, %v1795_v24 }
 0x441   : > { %v1799_v62 = vpop.f32.mrf.mxu1 }
 0x442   : > { %1833 = vst [vmem:[%s2974_s22 + $0x28] sm:$0xff] %v1825_v50  ;;  %v1826_v42 = vmul.f32 %v1818_v25, %v1799_v62 }
 0x443   : > { %v1801_v26 = vpop.f32.mrf.mxu1 }
 0x444   : > { %1834 = vst [vmem:[%s2974_s22 + $0x30] sm:$0xff] %v1826_v42  ;;  %v1827_v27 = vmul.f32 %v1819_v0, %v1801_v26 }
 0x446   : > { %1835 = vst [vmem:[%s2974_s22 + $0x38] sm:$0xff] %v1827_v27 }
 0x447   : > { %2246 = shalt.err (!%p2243_p1)
}
 0x448   : > { %s2247_s16 = scalar_lea.hbm %s2994_s26, 1024  ;;  %s2251_s27 = scalar_lea.hbm %s3049_s9, 2048 }
 0x449   : > { %p2248_p2 = scmp.ne.s32.totalorder %s2994_s26, %s2247_s16  ;;  %p2252_p5 = scmp.lt.s32.totalorder %s2994_s26, %s3049_s9 }
 0x44a   : > { %p2253_p6 = scmp.lt.s32.totalorder %s2251_s27, %s2247_s16 }
 0x44b   : > { %p2249_p3 = pnand %p2248_p2, %p3062_p13 }
 0x44c   : > { %p2254_p10 = por %p2253_p6, %p2252_p5 }
 0x44d   : > { %p2250_p9 = pneg %p2249_p3 }
 0x44f   : > { %p2255_p12 = pnand %p2254_p10, %p2250_p9 }
 0x451   : > { %2258 = shalt.err (!%p2255_p12)
}
 0x452   : > { %s2314_s13 = smov 256  }
 0x453   : > { %2078 = dma.vmem_to_hbm [thread:$0]  (%p3062_p13), %s2988_s24, 1024, %s2994_s26, %s2999_s21, %s2314_s13, %s2314_s13, %s2307_s28  }
 0x454 PF: > { %p2095_p4 = scmp.ge.s32.totalorder %s2301_s12, 2  ;;  %s1865_s14 = sand.u32 1, %s2289_s30  }
 0x455   : > { %p3063_p7 = scmp.ne.s32.totalorder %s3054_s20, 0  ;;  %s1866_s17 = scalar_lea.sflag [#allocation5], %s1865_s14 }
 0x457   : > { %p2088_p8 = pnand %p2095_p4, %p3063_p7 }
 0x459   : > { %p2089_p11 = pneg %p2088_p8 }
 0x45b   : > { %2284 = dma.done.wait (%p2089_p11), %s1866_s17, 1024  }
 0x45c   : > { %2286 = vsyncadd (%p2089_p11), %s1866_s17, 4294966272  ;;  %p21_p0 = scmp.ge.s32.totalorder %s2390_s15, 4   ;;  %s3064_s30 = smov %s2293_s10 }
 0x45d   : > { %s3065_s10 = smov %s2297_s11  ;;  %s3066_s11 = smov %s2401_s18 }
 0x45e   : > { %s3067_s12 = smov %s2390_s15  ;;  %23 = sbr.rel (!%p21_p0) target bundleno = 5 (0x5), region = 100 }
 0x463   :  { %1871 = vsyncpa [#allocation4], 1 }
 0x464   :  { %1873 = vsyncpa [#allocation4 + $0x1], 1 }
 0x465   :  { %1874 = vsyncpa [#allocation7], 1 }
 0x466   :  { %1875 = vsyncpa [#allocation5], 1 }
 0x467   :  { %1877 = vsyncpa [#allocation5 + $0x1], 1 }

</bundles_post_ra>
